<compile_context>
chip_gen: v6e
topology: v6e:2x2x1
jax: 0.10.0
libtpu: 0.0.40
codegen_flags: <defaults>
</compile_context>

<pallas_src>
import jax
import jax.numpy as jnp
from jax.experimental import pallas as pl
from jax.experimental.pallas import tpu as pltpu

NEG_SLOPE = 0.01   # PyTorch F.leaky_relu default
BN_EPS = 1e-5      # PyTorch BatchNorm1d default
LANE = 128
SUBLANE = 8


def _leaky_relu(x):
    return jnp.where(x >= 0, x, NEG_SLOPE * x)


# ---------------------------------------------------------------------------
# Kernel: fused 4-layer MLP (BN already folded into W/b), one batch tile.
# ---------------------------------------------------------------------------
def classifier_kernel(x_ref,
                      w1_ref, b1_ref,
                      w2_ref, b2_ref,
                      w3_ref, b3_ref,
                      w4_ref, b4_ref,
                      out_ref):
    # Activations kept in f32; cast to bf16 only at each MXU matmul.
    h = x_ref[...]

    h = jnp.dot(h.astype(jnp.bfloat16), w1_ref[...],
                preferred_element_type=jnp.float32) + b1_ref[...]
    h = _leaky_relu(h)

    h = jnp.dot(h.astype(jnp.bfloat16), w2_ref[...],
                preferred_element_type=jnp.float32) + b2_ref[...]
    h = _leaky_relu(h)

    h = jnp.dot(h.astype(jnp.bfloat16), w3_ref[...],
                preferred_element_type=jnp.float32) + b3_ref[...]
    h = _leaky_relu(h)

    h = jnp.dot(h.astype(jnp.bfloat16), w4_ref[...],
                preferred_element_type=jnp.float32) + b4_ref[...]
    out_ref[...] = jax.nn.sigmoid(h)


# ---------------------------------------------------------------------------
# Parameter construction (PyTorch-shaped raw params) + BN folding / packing.
# ---------------------------------------------------------------------------
def init_raw_params(key, in_features, out_features):
    """Deterministic synthetic parameters matching the PyTorch module shapes."""
    dims = [(in_features, 1024), (1024, 512), (512, 256), (256, out_features)]
    layers = []
    for i, (fi, fo) in enumerate(dims):
        key, kw, kb = jax.random.split(key, 3)
        layer = {
            "w": jax.random.normal(kw, (fo, fi), jnp.float32) / jnp.sqrt(fi),
            "b": 0.01 * jax.random.normal(kb, (fo,), jnp.float32),
        }
        if i < 3:  # bn1 / bn2 / bn3
            key, kg, kbe, km, kv = jax.random.split(key, 5)
            layer["gamma"] = 1.0 + 0.1 * jax.random.normal(kg, (fo,), jnp.float32)
            layer["beta"] = 0.1 * jax.random.normal(kbe, (fo,), jnp.float32)
            layer["mean"] = 0.1 * jax.random.normal(km, (fo,), jnp.float32)
            layer["var"] = 1.0 + 0.1 * jax.random.uniform(kv, (fo,), jnp.float32)
        layers.append(layer)
    return layers


def prepare_kernel_params(layers):
    """Fold eval-mode BN into W/b, transpose to [F_in, F_out], bf16 weights,
    zero-pad the final layer to a 128-lane-multiple output width."""
    out_features = layers[-1]["w"].shape[0]
    out_pad = ((out_features + LANE - 1) // LANE) * LANE

    kernel_args = []
    for i, layer in enumerate(layers):
        w = layer["w"].T            # [F_in, F_out]
        b = layer["b"]
        if "gamma" in layer:        # fold BatchNorm (eval) into the linear
            scale = layer["gamma"] * jax.lax.rsqrt(layer["var"] + BN_EPS)
            w = w * scale[None, :]
            b = (b - layer["mean"]) * scale + layer["beta"]
        if i == len(layers) - 1 and out_pad != out_features:
            w = jnp.pad(w, ((0, 0), (0, out_pad - out_features)))
            b = jnp.pad(b, (0, out_pad - out_features))
        kernel_args.append(w.astype(jnp.bfloat16))
        kernel_args.append(b.reshape(1, -1).astype(jnp.float32))
    return kernel_args, out_pad


# ---------------------------------------------------------------------------
# Wrapper: batch-gridded pallas_call with VMEM-resident weights.
# ---------------------------------------------------------------------------
def classifier_forward(x, kernel_args, out_features, out_pad, *, max_block_b=512):
    B, f_in = x.shape

    # Batch tile: multiple of 8 sublanes, capped to keep f32 intermediates
    # (tb, 1024) well inside scoped VMEM on v5e/v6e/v7x.
    tb = min(max_block_b, ((B + SUBLANE - 1) // SUBLANE) * SUBLANE)
    b_pad = ((B + tb - 1) // tb) * tb
    if b_pad != B:
        x = jnp.pad(x, ((0, b_pad - B), (0, 0)))

    grid = (b_pad // tb,)

    def resident_spec(shape):
        # Same block every grid step -> stays resident in VMEM (no re-DMA).
        return pl.BlockSpec(shape, lambda i: (0, 0))

    in_specs = [pl.BlockSpec((tb, f_in), lambda i: (i, 0))]
    in_specs += [resident_spec(p.shape) for p in kernel_args]
    out_specs = pl.BlockSpec((tb, out_pad), lambda i: (i, 0))

    out = pl.pallas_call(
        classifier_kernel,
        out_shape=jax.ShapeDtypeStruct((b_pad, out_pad), jnp.float32),
        grid=grid,
        in_specs=in_specs,
        out_specs=out_specs,
        compiler_params=pltpu.CompilerParams(
            dimension_semantics=("parallel",),          # v7x: shard batch over 2 TCs
            vmem_limit_bytes=32 * 1024 * 1024,
        ),
    )(x, *kernel_args)

    return out[:B, :out_features]


# ---------------------------------------------------------------------------
# References for validation.
# ---------------------------------------------------------------------------
def reference_forward_f32(x, layers):
    """Exact eval-mode semantics of the PyTorch module, all f32."""
    h = x
    for layer in layers:
        h = h @ layer["w"].T + layer["b"]
        if "gamma" in layer:
            inv = jax.lax.rsqrt(layer["var"] + BN_EPS)
            h = (h - layer["mean"]) * inv * layer["gamma"] + layer["beta"]
            h = _leaky_relu(h)
    return jax.nn.sigmoid(h)


def reference_forward_folded(x, kernel_args, out_features):
    """Same folded/bf16 parameters as the kernel consumes (tight tolerance)."""
    h = x
    n_layers = len(kernel_args) // 2
    for i in range(n_layers):
        w, b = kernel_args[2 * i], kernel_args[2 * i + 1]
        h = jnp.dot(h.astype(jnp.bfloat16), w,
                    preferred_element_type=jnp.float32) + b
        if i < n_layers - 1:
            h = _leaky_relu(h)
    return jax.nn.sigmoid(h)[:, :out_features]


if __name__ == "__main__":
    B, in_features, out_features = 8, 64, 16

    key = jax.random.PRNGKey(0)
    key, kx = jax.random.split(key)
    x = jax.random.normal(kx, (B, in_features), jnp.float32)

    layers = init_raw_params(key, in_features, out_features)
    kernel_args, out_pad = prepare_kernel_params(layers)

    out = classifier_forward(x, kernel_args, out_features, out_pad)
    out = jax.block_until_ready(out)
    assert out.shape == (B, out_features)

    # Tight check vs a reference using the identical folded bf16 parameters.
    ref_exact = reference_forward_folded(x, kernel_args, out_features)
    assert jnp.allclose(out, ref_exact, atol=2e-3, rtol=2e-3), "mismatch vs folded ref"

    # Loose check vs the full-precision, un-folded PyTorch-equivalent math
    # (bf16 weight rounding is the only source of difference).
    ref_f32 = reference_forward_f32(x, layers)
    assert jnp.allclose(out, ref_f32, atol=3e-2, rtol=3e-2), "mismatch vs f32 ref"

    print("KERNEL_OK")
</pallas_src>

<mosaic_0001>
module attributes {stable_mosaic.version = 11 : i64} {
  func.func @classifier_kernel(%arg0: i32, %arg1: memref<8x64xf32, #tpu.memory_space<vmem>>, %arg2: memref<64x1024xbf16, #tpu.memory_space<vmem>>, %arg3: memref<1x1024xf32, #tpu.memory_space<vmem>>, %arg4: memref<1024x512xbf16, #tpu.memory_space<vmem>>, %arg5: memref<1x512xf32, #tpu.memory_space<vmem>>, %arg6: memref<512x256xbf16, #tpu.memory_space<vmem>>, %arg7: memref<1x256xf32, #tpu.memory_space<vmem>>, %arg8: memref<256x128xbf16, #tpu.memory_space<vmem>>, %arg9: memref<1x128xf32, #tpu.memory_space<vmem>>, %arg10: memref<8x128xf32, #tpu.memory_space<vmem>>) attributes {dimension_semantics = [#tpu.dimension_semantics<parallel>], iteration_bounds = array<i64: 1>, scalar_prefetch = 0 : i64, scratch_operands = 0 : i64, tpu.core_type = #tpu.core_type<tc>, window_params = [{transform_indices = @transform_0, window_bounds = array<i64: 8, 64>}, {pipeline_mode = #tpu.pipeline_mode<synchronous>, transform_indices = @transform_1, window_bounds = array<i64: 64, 1024>}, {pipeline_mode = #tpu.pipeline_mode<synchronous>, transform_indices = @transform_2, window_bounds = array<i64: 1, 1024>}, {pipeline_mode = #tpu.pipeline_mode<synchronous>, transform_indices = @transform_3, window_bounds = array<i64: 1024, 512>}, {pipeline_mode = #tpu.pipeline_mode<synchronous>, transform_indices = @transform_4, window_bounds = array<i64: 1, 512>}, {pipeline_mode = #tpu.pipeline_mode<synchronous>, transform_indices = @transform_5, window_bounds = array<i64: 512, 256>}, {pipeline_mode = #tpu.pipeline_mode<synchronous>, transform_indices = @transform_6, window_bounds = array<i64: 1, 256>}, {pipeline_mode = #tpu.pipeline_mode<synchronous>, transform_indices = @transform_7, window_bounds = array<i64: 256, 128>}, {pipeline_mode = #tpu.pipeline_mode<synchronous>, transform_indices = @transform_8, window_bounds = array<i64: 1, 128>}, {transform_indices = @transform_9, window_bounds = array<i64: 8, 128>}]} {
    %c0 = arith.constant 0 : index
    %c0_0 = arith.constant 0 : index
    %0 = vector.load %arg1[%c0, %c0_0] : memref<8x64xf32, #tpu.memory_space<vmem>>, vector<8x64xf32>
    %1 = arith.truncf %0 : vector<8x64xf32> to vector<8x64xbf16>
    %c0_1 = arith.constant 0 : index
    %c0_2 = arith.constant 0 : index
    %2 = vector.load %arg2[%c0_1, %c0_2] : memref<64x1024xbf16, #tpu.memory_space<vmem>>, vector<64x1024xbf16>
    %cst = arith.constant dense<0.000000e+00> : vector<8x1024xf32>
    %3 = tpu.matmul %1, %2, %cst {dimension_numbers = #tpu.dot_dimension_numbers<[1], [0], [0], [1], [0, 0, 1, 1], [], []>} : vector<8x64xbf16>, vector<64x1024xbf16>, vector<8x1024xf32> -> vector<8x1024xf32>
    %c0_3 = arith.constant 0 : index
    %c0_4 = arith.constant 0 : index
    %4 = vector.load %arg3[%c0_3, %c0_4] : memref<1x1024xf32, #tpu.memory_space<vmem>>, vector<1x1024xf32>
    %5 = vector.broadcast %4 : vector<1x1024xf32> to vector<8x1024xf32>
    %6 = arith.addf %3, %5 : vector<8x1024xf32>
    %cst_5 = arith.constant 0.000000e+00 : f32
    %7 = vector.broadcast %cst_5 : f32 to vector<8x1024xf32>
    %8 = arith.cmpf oge, %6, %7 : vector<8x1024xf32>
    %cst_6 = arith.constant 0.00999999977 : f32
    %9 = vector.broadcast %cst_6 : f32 to vector<8x1024xf32>
    %10 = arith.mulf %9, %6 : vector<8x1024xf32>
    %11 = arith.select %8, %6, %10 : vector<8x1024xi1>, vector<8x1024xf32>
    %12 = arith.truncf %11 : vector<8x1024xf32> to vector<8x1024xbf16>
    %c0_7 = arith.constant 0 : index
    %c0_8 = arith.constant 0 : index
    %13 = vector.load %arg4[%c0_7, %c0_8] : memref<1024x512xbf16, #tpu.memory_space<vmem>>, vector<1024x512xbf16>
    %cst_9 = arith.constant dense<0.000000e+00> : vector<8x512xf32>
    %14 = tpu.matmul %12, %13, %cst_9 {dimension_numbers = #tpu.dot_dimension_numbers<[1], [0], [0], [1], [0, 0, 1, 1], [], []>} : vector<8x1024xbf16>, vector<1024x512xbf16>, vector<8x512xf32> -> vector<8x512xf32>
    %c0_10 = arith.constant 0 : index
    %c0_11 = arith.constant 0 : index
    %15 = vector.load %arg5[%c0_10, %c0_11] : memref<1x512xf32, #tpu.memory_space<vmem>>, vector<1x512xf32>
    %16 = vector.broadcast %15 : vector<1x512xf32> to vector<8x512xf32>
    %17 = arith.addf %14, %16 : vector<8x512xf32>
    %cst_12 = arith.constant 0.000000e+00 : f32
    %18 = vector.broadcast %cst_12 : f32 to vector<8x512xf32>
    %19 = arith.cmpf oge, %17, %18 : vector<8x512xf32>
    %cst_13 = arith.constant 0.00999999977 : f32
    %20 = vector.broadcast %cst_13 : f32 to vector<8x512xf32>
    %21 = arith.mulf %20, %17 : vector<8x512xf32>
    %22 = arith.select %19, %17, %21 : vector<8x512xi1>, vector<8x512xf32>
    %23 = arith.truncf %22 : vector<8x512xf32> to vector<8x512xbf16>
    %c0_14 = arith.constant 0 : index
    %c0_15 = arith.constant 0 : index
    %24 = vector.load %arg6[%c0_14, %c0_15] : memref<512x256xbf16, #tpu.memory_space<vmem>>, vector<512x256xbf16>
    %cst_16 = arith.constant dense<0.000000e+00> : vector<8x256xf32>
    %25 = tpu.matmul %23, %24, %cst_16 {dimension_numbers = #tpu.dot_dimension_numbers<[1], [0], [0], [1], [0, 0, 1, 1], [], []>} : vector<8x512xbf16>, vector<512x256xbf16>, vector<8x256xf32> -> vector<8x256xf32>
    %c0_17 = arith.constant 0 : index
    %c0_18 = arith.constant 0 : index
    %26 = vector.load %arg7[%c0_17, %c0_18] : memref<1x256xf32, #tpu.memory_space<vmem>>, vector<1x256xf32>
    %27 = vector.broadcast %26 : vector<1x256xf32> to vector<8x256xf32>
    %28 = arith.addf %25, %27 : vector<8x256xf32>
    %cst_19 = arith.constant 0.000000e+00 : f32
    %29 = vector.broadcast %cst_19 : f32 to vector<8x256xf32>
    %30 = arith.cmpf oge, %28, %29 : vector<8x256xf32>
    %cst_20 = arith.constant 0.00999999977 : f32
    %31 = vector.broadcast %cst_20 : f32 to vector<8x256xf32>
    %32 = arith.mulf %31, %28 : vector<8x256xf32>
    %33 = arith.select %30, %28, %32 : vector<8x256xi1>, vector<8x256xf32>
    %34 = arith.truncf %33 : vector<8x256xf32> to vector<8x256xbf16>
    %c0_21 = arith.constant 0 : index
    %c0_22 = arith.constant 0 : index
    %35 = vector.load %arg8[%c0_21, %c0_22] : memref<256x128xbf16, #tpu.memory_space<vmem>>, vector<256x128xbf16>
    %cst_23 = arith.constant dense<0.000000e+00> : vector<8x128xf32>
    %36 = tpu.matmul %34, %35, %cst_23 {dimension_numbers = #tpu.dot_dimension_numbers<[1], [0], [0], [1], [0, 0, 1, 1], [], []>} : vector<8x256xbf16>, vector<256x128xbf16>, vector<8x128xf32> -> vector<8x128xf32>
    %c0_24 = arith.constant 0 : index
    %c0_25 = arith.constant 0 : index
    %37 = vector.load %arg9[%c0_24, %c0_25] : memref<1x128xf32, #tpu.memory_space<vmem>>, vector<1x128xf32>
    %38 = vector.broadcast %37 : vector<1x128xf32> to vector<8x128xf32>
    %39 = arith.addf %36, %38 : vector<8x128xf32>
    %40 = arith.negf %39 : vector<8x128xf32>
    %41 = math.exp %40 : vector<8x128xf32>
    %cst_26 = arith.constant 1.000000e+00 : f32
    %42 = vector.broadcast %cst_26 : f32 to vector<8x128xf32>
    %43 = arith.addf %42, %41 : vector<8x128xf32>
    %44 = arith.divf %42, %43 : vector<8x128xf32>
    %c0_27 = arith.constant 0 : index
    %c0_28 = arith.constant 0 : index
    %45 = vector.load %arg10[%c0_27, %c0_28] : memref<8x128xf32, #tpu.memory_space<vmem>>, vector<8x128xf32>
    tpu.vector_store %arg10[%c0_27, %c0_28], %44 {strides = array<i32>} : memref<8x128xf32, #tpu.memory_space<vmem>>, vector<8x128xf32>,
    return
  }
  func.func @transform_0(%arg0: i32) -> (i32, i32) {
    %c0_i32 = arith.constant 0 : i32
    %c0_i32_0 = arith.constant 0 : i32
    return %arg0, %c0_i32 : i32, i32
  }
  func.func @transform_1(%arg0: i32) -> (i32, i32) {
    %c0_i32 = arith.constant 0 : i32
    %c0_i32_0 = arith.constant 0 : i32
    %c0_i32_1 = arith.constant 0 : i32
    return %c0_i32, %c0_i32_0 : i32, i32
  }
  func.func @transform_2(%arg0: i32) -> (i32, i32) {
    %c0_i32 = arith.constant 0 : i32
    %c0_i32_0 = arith.constant 0 : i32
    %c0_i32_1 = arith.constant 0 : i32
    return %c0_i32, %c0_i32_0 : i32, i32
  }
  func.func @transform_3(%arg0: i32) -> (i32, i32) {
    %c0_i32 = arith.constant 0 : i32
    %c0_i32_0 = arith.constant 0 : i32
    %c0_i32_1 = arith.constant 0 : i32
    return %c0_i32, %c0_i32_0 : i32, i32
  }
  func.func @transform_4(%arg0: i32) -> (i32, i32) {
    %c0_i32 = arith.constant 0 : i32
    %c0_i32_0 = arith.constant 0 : i32
    %c0_i32_1 = arith.constant 0 : i32
    return %c0_i32, %c0_i32_0 : i32, i32
  }
  func.func @transform_5(%arg0: i32) -> (i32, i32) {
    %c0_i32 = arith.constant 0 : i32
    %c0_i32_0 = arith.constant 0 : i32
    %c0_i32_1 = arith.constant 0 : i32
    return %c0_i32, %c0_i32_0 : i32, i32
  }
  func.func @transform_6(%arg0: i32) -> (i32, i32) {
    %c0_i32 = arith.constant 0 : i32
    %c0_i32_0 = arith.constant 0 : i32
    %c0_i32_1 = arith.constant 0 : i32
    return %c0_i32, %c0_i32_0 : i32, i32
  }
  func.func @transform_7(%arg0: i32) -> (i32, i32) {
    %c0_i32 = arith.constant 0 : i32
    %c0_i32_0 = arith.constant 0 : i32
    %c0_i32_1 = arith.constant 0 : i32
    return %c0_i32, %c0_i32_0 : i32, i32
  }
  func.func @transform_8(%arg0: i32) -> (i32, i32) {
    %c0_i32 = arith.constant 0 : i32
    %c0_i32_0 = arith.constant 0 : i32
    %c0_i32_1 = arith.constant 0 : i32
    return %c0_i32, %c0_i32_0 : i32, i32
  }
  func.func @transform_9(%arg0: i32) -> (i32, i32) {
    %c0_i32 = arith.constant 0 : i32
    %c0_i32_0 = arith.constant 0 : i32
    return %arg0, %c0_i32 : i32, i32
  }
}

</mosaic_0001>

<bundles_post_ra>
// kernel: tpu_custom_call.1
= control target key start
LH: loop header
LB: loop body
LE: loop exit
PB: predicated region body
PF: predicated region fallthrough
CT: control target
= control target key end

     0   :  { %14 = vsyncpa [#allocation3], 0  ;;  %s4402_s0 = inlined_call_operand.hbm [shape: f32[8,64], index: 0, kind: input, shape index: {}]   ;;  %s4403_s1 = inlined_call_operand.hbm [shape: bf16[64,1024], index: 1, kind: input, shape index: {}]   ;;  %s4404_s2 = inlined_call_operand.hbm [shape: f32[1,1024], index: 2, kind: input, shape index: {}]   ;;  %s4405_s3 = inlined_call_operand.hbm [shape: bf16[1024,512], index: 3, kind: input, shape index: {}]   ;;  %s4406_s4 = inlined_call_operand.vmem [shape: f32[1,512], index: 4, kind: input, shape index: {}]   ;;  %s4407_s5 = inlined_call_operand.hbm [shape: bf16[512,256], index: 5, kind: input, shape index: {}]   ;;  %s4408_s6 = inlined_call_operand.vmem [shape: f32[1,256], index: 6, kind: input, shape index: {}]   ;;  %s4409_s7 = inlined_call_operand.hbm [shape: bf16[256,128], index: 7, kind: input, shape index: {}]   ;;  %s4410_s8 = inlined_call_operand.vmem [shape: f32[1,128], index: 8, kind: input, shape index: {}]   ;;  %s4411_s9 = inlined_call_operand.hbm [shape: f32[8,128], index: 9, kind: output, shape index: {}]  }
   0x1   :  { %15 = vsyncpa [#allocation6], 0 }
   0x2   :  { %16 = vsyncpa [#allocation9], 0 }
   0x3   :  { %17 = vsyncpa [#allocation12], 0 }
   0x4   :  { %18 = vsyncpa [#allocation4], 0  ;;  %s4198_s30 = smov [#allocation5]  }
   0x5   :  { %s34_s10 = sshll.u32 %s4198_s30, 4  ;;  %s35_s10 = int_to_ptr.vmem [resolvable:$true] %s34_s10 }
   0x6   :  { %s4056_s11 = scalar_lea.vmem %s35_s10, 4096  ;;  %p4061_p1 = scmp.lt.s32.totalorder %s35_s10, %s35_s10 }
   0x7   :  { %p4057_p0 = scmp.ne.s32.totalorder %s35_s10, %s4056_s11  ;;  %p4062_p2 = scmp.lt.s32.totalorder %s4056_s11, %s4056_s11 }
   0x9   :  { %p4063_p3 = por %p4062_p2, %p4061_p1 }
   0xb   :  { %p4064_p4 = pnand %p4063_p3, %p4057_p0 }
   0xd   :  { %4067 = shalt.err (!%p4064_p4)
}
   0xe   :  { %s4199_s12 = smov 512   ;;  %s4200_s13 = smov 32  }
   0xf   :  { %40 = dma.hbm_to_vmem [thread:$0]  %s4403_s1, 4096, %s35_s10, [#allocation6], %s4199_s12, %s4199_s12, %s4200_s13  }
  0x10   :  { %s4201_s16 = smov [#allocation8]  }
  0x11   :  { %s56_s17 = sshll.u32 %s4201_s16, 4  ;;  %s57_s17 = int_to_ptr.vmem [resolvable:$true] %s56_s17 }
  0x12   :  { %s4076_s18 = scalar_lea.vmem %s57_s17, 32768  ;;  %p4081_p6 = scmp.lt.s32.totalorder %s57_s17, %s57_s17 }
  0x13   :  { %p4077_p5 = scmp.ne.s32.totalorder %s57_s17, %s4076_s18  ;;  %p4082_p7 = scmp.lt.s32.totalorder %s4076_s18, %s4076_s18 }
  0x15   :  { %p4083_p8 = por %p4082_p7, %p4081_p6 }
  0x17   :  { %p4084_p9 = pnand %p4083_p8, %p4077_p5 }
  0x19   :  { %4087 = shalt.err (!%p4084_p9)
}
  0x1a   :  { %s4202_s19 = smov 256   ;;  %s4203_s20 = smov 16  }
  0x1b   :  { %62 = dma.hbm_to_vmem [thread:$0]  %s4405_s3, 32768, %s57_s17, [#allocation9], %s4202_s19, %s4202_s19, %s4203_s20  }
  0x1c   :  { %s4204_s23 = smov [#allocation2]   ;;  %s4205_s25 = smov [#allocation7]  }
  0x1d   :  { %s25_s24 = sshll.u32 %s4204_s23, 4  ;;  %s47_s1 = sshll.u32 %s4205_s25, 4  ;;  %s26_s24 = int_to_ptr.vmem [resolvable:$true] %s25_s24  ;;  %s48_s1 = int_to_ptr.vmem [resolvable:$true] %s47_s1 }
  0x1e   :  { %s4096_s26 = scalar_lea.vmem %s26_s24, 128  ;;  %p4101_p11 = scmp.lt.s32.totalorder %s26_s24, %s26_s24 }
  0x1f   :  { %p4097_p10 = scmp.ne.s32.totalorder %s26_s24, %s4096_s26  ;;  %p4102_p12 = scmp.lt.s32.totalorder %s4096_s26, %s4096_s26 }
  0x21   :  { %p4103_p13 = por %p4102_p12, %p4101_p11 }
  0x23   :  { %p4104_p0 = pnand %p4103_p13, %p4097_p10 }
  0x25   :  { %4107 = shalt.err (!%p4104_p0)
}
  0x26   :  { %28 = dma.hbm_to_vmem [thread:$0]  %s4402_s0, 128, %s26_s24, [#allocation3]  }
  0x27   :  { %s4116_s29 = scalar_lea.vmem %s48_s1, 128  ;;  %p4121_p2 = scmp.lt.s32.totalorder %s48_s1, %s48_s1 }
  0x28   :  { %p4117_p1 = scmp.ne.s32.totalorder %s48_s1, %s4116_s29  ;;  %p4122_p3 = scmp.lt.s32.totalorder %s4116_s29, %s4116_s29 }
  0x2a   :  { %p4123_p4 = por %p4122_p3, %p4121_p2 }
  0x2c   :  { %p4124_p5 = pnand %p4123_p4, %p4117_p1 }
  0x2e   :  { %4127 = shalt.err (!%p4124_p5)
}
  0x2f   :  { %50 = dma.hbm_to_vmem [thread:$0]  %s4404_s2, 128, %s48_s1, [#allocation6]  }
  0x30   :  { %s4206_s10 = smov [#allocation10]  }
  0x31   :  { %s70_s11 = sshll.u32 %s4206_s10, 4  ;;  %s71_s11 = int_to_ptr.vmem [resolvable:$true] %s70_s11 }
  0x32   :  { %s4136_s12 = scalar_lea.vmem %s71_s11, 8192  ;;  %p4141_p7 = scmp.lt.s32.totalorder %s71_s11, %s71_s11 }
  0x33   :  { %p4137_p6 = scmp.ne.s32.totalorder %s71_s11, %s4136_s12  ;;  %p4142_p8 = scmp.lt.s32.totalorder %s4136_s12, %s4136_s12 }
  0x35   :  { %p4143_p9 = por %p4142_p8, %p4141_p7 }
  0x37   :  { %p4144_p10 = pnand %p4143_p9, %p4137_p6 }
  0x39   :  { %4147 = shalt.err (!%p4144_p10)
}
  0x3a   :  { %s4207_s0 = smov 128   ;;  %s4208_s13 = smov 8  }
  0x3b   :  { %76 = dma.hbm_to_vmem [thread:$0]  %s4407_s5, 8192, %s71_s11, [#allocation9], %s4207_s0, %s4207_s0, %s4208_s13  }
  0x3c   :  { %s4209_s16 = smov [#allocation11]  }
  0x3d   :  { %s84_s17 = sshll.u32 %s4209_s16, 4  ;;  %s85_s17 = int_to_ptr.vmem [resolvable:$true] %s84_s17 }
  0x3e   :  { %s4156_s2 = scalar_lea.vmem %s85_s17, 2048  ;;  %p4161_p12 = scmp.lt.s32.totalorder %s85_s17, %s85_s17 }
  0x3f   :  { %p4157_p11 = scmp.ne.s32.totalorder %s85_s17, %s4156_s2  ;;  %p4162_p13 = scmp.lt.s32.totalorder %s4156_s2, %s4156_s2 }
  0x41   :  { %p4163_p0 = por %p4162_p13, %p4161_p12 }
  0x43   :  { %p4164_p1 = pnand %p4163_p0, %p4157_p11 }
  0x45   :  { %4167 = shalt.err (!%p4164_p1)
}
  0x46   :  { %s4210_s18 = smov 64   ;;  %s4211_s19 = smov 4  }
  0x47   :  { %90 = dma.hbm_to_vmem [thread:$0]  %s4409_s7, 2048, %s85_s17, [#allocation12], %s4210_s18, %s4210_s18, %s4211_s19  }
  0x48   :  { %4188 = dma.done.wait [#allocation3], 128  }
  0x49   :  { %4189 = vsyncadd [#allocation3], 4294967168 }
  0x4a   :  { %4190 = dma.done.wait [#allocation6], 4224  }
  0x4b   :  { %4191 = vsyncadd [#allocation6], 4294963072 }
  0x4c   :  { %4192 = dma.done.wait [#allocation9], 40960  }
  0x4d   :  { %4193 = vsyncadd [#allocation9], 4294926336 }
  0x4e   :  { %4194 = dma.done.wait [#allocation12], 2048  }
  0x4f   :  { %4195 = vsyncadd [#allocation12], 4294965248  ;;  %v4212_v0 = vmov 0   ;;  %v138_v1 = vld [vmem:[#allocation5 + $0xc0] sm:$0xff]  ;;  %v140_v14 = vld [vmem:[#allocation5 + $0xd0] sm:$0xff]  ;;  %vm348_vm0 = vcmask 523264  }
  0x50   :  { %384 = vmatprep.mubr.bf16.mxu1 %v4212_v0  ;;  %466 = vmatprep.mubr.bf16.mxu0 %v4212_v0  ;;  %v142_v2 = vld [vmem:[#allocation5 + $0xe0] sm:$0xff]  ;;  %v144_v15 = vld [vmem:[#allocation5 + $0xf0] sm:$0xff]  ;;  %v112_v25 = vld [vmem:[#allocation2] sm:$0xff]  ;;  %s4213_s24 = smov [#allocation13]  }
  0x51   :  { %v130_v3 = vld [vmem:[#allocation5 + $0x80] sm:$0xff]  ;;  %v3161_v4 = vcombine.high %v138_v1, %v142_v2  ;;  %v3160_v5 = vcombine.low %v138_v1, %v142_v2  ;;  %v132_v16 = vld [vmem:[#allocation5 + $0x90] sm:$0xff]  ;;  %v3165_v18 = vcombine.high %v140_v14, %v144_v15  ;;  %v3164_v19 = vcombine.low %v140_v14, %v144_v15  ;;  %v139_v26 = vld [vmem:[#allocation5 + $0xc8] sm:$0xff]  ;;  %s3124_s25 = sshll.u32 %s4213_s24, 4  ;;  %s3125_s25 = int_to_ptr.vmem [resolvable:$true] %s3124_s25 }
  0x52   :  { %v134_v6 = vld [vmem:[#allocation5 + $0xa0] sm:$0xff]  ;;  %v136_v17 = vld [vmem:[#allocation5 + $0xb0] sm:$0xff]  ;;  %v143_v27 = vld [vmem:[#allocation5 + $0xe8] sm:$0xff]  ;;  %v4284_v37 = vpack.c.bf16 %v112_v25, %v112_v25  ;;  %s4168_s1 = scalar_lea.vmem %s3125_s25, 128  ;;  %p4173_p3 = scmp.lt.s32.totalorder %s3125_s25, %s3125_s25 }
  0x53   :  { %v3153_v7 = vcombine.high %v130_v3, %v134_v6  ;;  %v122_v8 = vld [vmem:[#allocation5 + $0x40] sm:$0xff]  ;;  %360 = vmatprep.subr.bf16.mxu1 %v3161_v4  ;;  %v3152_v10 = vcombine.low %v130_v3, %v134_v6  ;;  %v3157_v20 = vcombine.high %v132_v16, %v136_v17  ;;  %v124_v22 = vld [vmem:[#allocation5 + $0x50] sm:$0xff]  ;;  %442 = vmatprep.subr.bf16.mxu0 %v3165_v18  ;;  %v131_v34 = vld [vmem:[#allocation5 + $0x88] sm:$0xff]  ;;  %p4169_p2 = scmp.ne.s32.totalorder %s3125_s25, %s4168_s1  ;;  %p4174_p4 = scmp.lt.s32.totalorder %s4168_s1, %s4168_s1 }
  0x54   :  { %v126_v9 = vld [vmem:[#allocation5 + $0x60] sm:$0xff]  ;;  %361 = vmatpush1.bf16.msra.mxu1 %v3160_v5  ;;  %v128_v23 = vld [vmem:[#allocation5 + $0x70] sm:$0xff]  ;;  %443 = vmatpush1.bf16.msra.mxu0 %v3164_v19  ;;  %v3156_v28 = vcombine.low %v132_v16, %v136_v17  ;;  %v3163_v33 = vcombine.high %v139_v26, %v143_v27  ;;  %v135_v35 = vld [vmem:[#allocation5 + $0xa8] sm:$0xff]  ;;  %v3162_v39 = vcombine.low %v139_v26, %v143_v27 }
  0x55   :  { %362 = vmatprep.subr.bf16.mxu1 %v3153_v7  ;;  %v3145_v11 = vcombine.high %v122_v8, %v126_v9  ;;  %v114_v12 = vld [vmem:[#allocation5] sm:$0xff]  ;;  %v3144_v21 = vcombine.low %v122_v8, %v126_v9  ;;  %444 = vmatprep.subr.bf16.mxu0 %v3157_v20  ;;  %v3149_v29 = vcombine.high %v124_v22, %v128_v23  ;;  %v116_v30 = vld [vmem:[#allocation5 + $0x10] sm:$0xff]  ;;  %v123_v41 = vld [vmem:[#allocation5 + $0x48] sm:$0xff]  ;;  %p4175_p5 = por %p4174_p4, %p4173_p3 }
  0x56   :  { %v118_v13 = vld [vmem:[#allocation5 + $0x20] sm:$0xff]  ;;  %v120_v32 = vld [vmem:[#allocation5 + $0x30] sm:$0xff]  ;;  %v3148_v36 = vcombine.low %v124_v22, %v128_v23  ;;  %v3155_v40 = vcombine.high %v131_v34, %v135_v35  ;;  %v127_v42 = vld [vmem:[#allocation5 + $0x68] sm:$0xff]  ;;  %v3154_v45 = vcombine.low %v131_v34, %v135_v35 }
  0x57   :  { %v3137_v24 = vcombine.high %v114_v12, %v118_v13  ;;  %v3136_v31 = vcombine.low %v114_v12, %v118_v13  ;;  %v3141_v38 = vcombine.high %v116_v30, %v120_v32  ;;  %v3140_v43 = vcombine.low %v116_v30, %v120_v32  ;;  %v3550_v44 = vld [vmem:[#allocation8 + $0xe4] ss:$16 sps:$4 sm:$0xff]   ;;  %v3548_v49 = vld [vmem:[#allocation8 + $0xe0] ss:$16 sps:$4 sm:$0xff]   ;;  %p4176_p6 = pnand %p4175_p5, %p4169_p2 }
  0x58   :  { %363 = vmatpush1.bf16.msra.mxu1 %v3152_v10  ;;  %445 = vmatpush1.bf16.msra.mxu0 %v3156_v28  ;;  %v3147_v46 = vcombine.high %v123_v41, %v127_v42  ;;  %v115_v47 = vld [vmem:[#allocation5 + $0x8] sm:$0xff]  ;;  %v3146_v51 = vcombine.low %v123_v41, %v127_v42  ;;  %v141_v53 = vld [vmem:[#allocation5 + $0xd8] sm:$0xff] }
  0x59   :  { %364 = vmatprep.subr.bf16.mxu1 %v3145_v11  ;;  %446 = vmatprep.subr.bf16.mxu0 %v3149_v29  ;;  %v119_v48 = vld [vmem:[#allocation5 + $0x28] sm:$0xff]  ;;  %v145_v54 = vld [vmem:[#allocation5 + $0xf8] sm:$0xff] }
  0x5a   :  { %v3553_v50 = vld [vmem:[#allocation8 + $0xc4] ss:$16 sps:$4 sm:$0xff]   ;;  %v3139_v52 = vcombine.high %v115_v47, %v119_v48  ;;  %v3551_v55 = vld [vmem:[#allocation8 + $0xc0] ss:$16 sps:$4 sm:$0xff]   ;;  %v3138_v57 = vcombine.low %v115_v47, %v119_v48  ;;  %v3167_v58 = vcombine.high %v141_v53, %v145_v54  ;;  %v3166_v63 = vcombine.low %v141_v53, %v145_v54 }
  0x5b   :  { %v3556_v56 = vld [vmem:[#allocation8 + $0xa4] ss:$16 sps:$4 sm:$0xff]   ;;  %v3554_v61 = vld [vmem:[#allocation8 + $0xa0] ss:$16 sps:$4 sm:$0xff]  }
  0x5c   :  { %365 = vmatpush1.bf16.msra.mxu1 %v3144_v21  ;;  %447 = vmatpush1.bf16.msra.mxu0 %v3148_v36  ;;  %v133_v59 = vld [vmem:[#allocation5 + $0x98] sm:$0xff] }
  0x5d   :  { %366 = vmatprep.subr.bf16.mxu1 %v3137_v24  ;;  %448 = vmatprep.subr.bf16.mxu0 %v3141_v38  ;;  %v137_v60 = vld [vmem:[#allocation5 + $0xb8] sm:$0xff] }
  0x5e   :  { %v3559_v62 = vld [vmem:[#allocation8 + $0x84] ss:$16 sps:$4 sm:$0xff]   ;;  %v3159_v1 = vcombine.high %v133_v59, %v137_v60  ;;  %v3557_v4 = vld [vmem:[#allocation8 + $0x80] ss:$16 sps:$4 sm:$0xff]   ;;  %v3158_v6 = vcombine.low %v133_v59, %v137_v60 }
  0x5f   :  { %v125_v2 = vld [vmem:[#allocation5 + $0x58] sm:$0xff] }
  0x60   :  { %367 = vmatpush1.bf16.msra.mxu1 %v3136_v31  ;;  %449 = vmatpush1.bf16.msra.mxu0 %v3140_v43  ;;  %v129_v3 = vld [vmem:[#allocation5 + $0x78] sm:$0xff] }
  0x61   :  { %401 = vmatprep.subr.bf16.mxu1 %v3163_v33  ;;  %2106 = vmatprep.subr.bf16.mxu0 %v3550_v44  ;;  %v3562_v5 = vld [vmem:[#allocation8 + $0x64] ss:$16 sps:$4 sm:$0xff]   ;;  %v3151_v7 = vcombine.high %v125_v2, %v129_v3  ;;  %v3560_v10 = vld [vmem:[#allocation8 + $0x60] ss:$16 sps:$4 sm:$0xff]   ;;  %v3150_v12 = vcombine.low %v125_v2, %v129_v3 }
  0x62   :  { %v117_v8 = vld [vmem:[#allocation5 + $0x18] sm:$0xff] }
  0x63   :  { %3168 = vmatmul.mubr.msk.bf16.vlgmr.msra.gmra.mxu1 %vm348_vm0, %v4284_v37  ;;  %3170 = vmatmul.mubr.msk.bf16.vlgmr.msra.gmra.mxu0 %vm348_vm0, %v4284_v37  ;;  %v121_v9 = vld [vmem:[#allocation5 + $0x38] sm:$0xff] }
  0x64   :  { %402 = vmatpush1.bf16.msra.mxu1 %v3162_v39  ;;  %425 = vmatprep.mubr.bf16.mxu1 %v4212_v0  ;;  %v3568_v11 = vld [vmem:[#allocation8 + $0x44] ss:$16 sps:$4 sm:$0xff]   ;;  %v3143_v13 = vcombine.high %v117_v8, %v121_v9  ;;  %v3566_v14 = vld [vmem:[#allocation8 + $0x40] ss:$16 sps:$4 sm:$0xff]   ;;  %v3142_v17 = vcombine.low %v117_v8, %v121_v9  ;;  %v4301_v9 = vld [vmem:[#allocation7] sm:$0xff] }
  0x65   :  { %403 = vmatprep.subr.bf16.mxu1 %v3155_v40  ;;  %2107 = vmatpush1.bf16.msra.mxu0 %v3548_v49  ;;  %v3565_v15 = vld [vmem:[#allocation8 + $0x2e4] ss:$16 sps:$4 sm:$0xff]   ;;  %v3563_v19 = vld [vmem:[#allocation8 + $0x2e0] ss:$16 sps:$4 sm:$0xff]  }
  0x66   :  { %2108 = vmatprep.subr.bf16.mxu0 %v3553_v50  ;;  %v3574_v16 = vld [vmem:[#allocation8 + $0x24] ss:$16 sps:$4 sm:$0xff]   ;;  %v3578_v21 = vld [vmem:[#allocation8] ss:$16 sps:$4 sm:$0xff]  }
  0x67   :  { %v3580_v18 = vld [vmem:[#allocation8 + $0x4] ss:$16 sps:$4 sm:$0xff]   ;;  %v3569_v23 = vld [vmem:[#allocation8 + $0x2c0] ss:$16 sps:$4 sm:$0xff]  }
  0x68   :  { %404 = vmatpush1.bf16.msra.mxu1 %v3154_v45  ;;  %v3571_v20 = vld [vmem:[#allocation8 + $0x2c4] ss:$16 sps:$4 sm:$0xff]   ;;  %v3584_v25 = vld [vmem:[#allocation8 + $0x1e0] ss:$16 sps:$4 sm:$0xff]  }
  0x69   :  { %405 = vmatprep.subr.bf16.mxu1 %v3147_v46  ;;  %2109 = vmatpush1.bf16.msra.mxu0 %v3551_v55  ;;  %v3586_v22 = vld [vmem:[#allocation8 + $0x1e4] ss:$16 sps:$4 sm:$0xff]   ;;  %v3575_v27 = vld [vmem:[#allocation8 + $0x2a0] ss:$16 sps:$4 sm:$0xff]  }
  0x6a   :  { %2110 = vmatprep.subr.bf16.mxu0 %v3556_v56  ;;  %v3577_v24 = vld [vmem:[#allocation8 + $0x2a4] ss:$16 sps:$4 sm:$0xff]   ;;  %v3590_v29 = vld [vmem:[#allocation8 + $0x1c0] ss:$16 sps:$4 sm:$0xff]  }
  0x6b   :  { %v3592_v26 = vld [vmem:[#allocation8 + $0x1c4] ss:$16 sps:$4 sm:$0xff]   ;;  %v3581_v31 = vld [vmem:[#allocation8 + $0x280] ss:$16 sps:$4 sm:$0xff]  }
  0x6c   :  { %406 = vmatpush1.bf16.msra.mxu1 %v3146_v51  ;;  %v3583_v28 = vld [vmem:[#allocation8 + $0x284] ss:$16 sps:$4 sm:$0xff]   ;;  %v3596_v33 = vld [vmem:[#allocation8 + $0x1a0] ss:$16 sps:$4 sm:$0xff]  }
  0x6d   :  { %407 = vmatprep.subr.bf16.mxu1 %v3139_v52  ;;  %2111 = vmatpush1.bf16.msra.mxu0 %v3554_v61  ;;  %v3598_v30 = vld [vmem:[#allocation8 + $0x1a4] ss:$16 sps:$4 sm:$0xff]   ;;  %v3587_v35 = vld [vmem:[#allocation8 + $0x260] ss:$16 sps:$4 sm:$0xff]  }
  0x6e   :  { %2112 = vmatprep.subr.bf16.mxu0 %v3559_v62  ;;  %v3589_v32 = vld [vmem:[#allocation8 + $0x264] ss:$16 sps:$4 sm:$0xff]   ;;  %v3593_v39 = vld [vmem:[#allocation8 + $0x240] ss:$16 sps:$4 sm:$0xff]  }
  0x6f   :  { %v3604_v34 = vld [vmem:[#allocation8 + $0x184] ss:$16 sps:$4 sm:$0xff]   ;;  %v3608_v41 = vld [vmem:[#allocation8 + $0x160] ss:$16 sps:$4 sm:$0xff]  }
  0x70   :  { %408 = vmatpush1.bf16.msra.mxu1 %v3138_v57  ;;  %v3595_v36 = vld [vmem:[#allocation8 + $0x244] ss:$16 sps:$4 sm:$0xff]   ;;  %v3599_v43 = vld [vmem:[#allocation8 + $0x220] ss:$16 sps:$4 sm:$0xff]  }
  0x71   :  { %483 = vmatprep.subr.bf16.mxu1 %v3167_v58  ;;  %2113 = vmatpush1.bf16.msra.mxu0 %v3557_v4  ;;  %v3610_v38 = vld [vmem:[#allocation8 + $0x164] ss:$16 sps:$4 sm:$0xff]   ;;  %v3614_v45 = vld [vmem:[#allocation8 + $0x140] ss:$16 sps:$4 sm:$0xff]  }
  0x72   :  { %2114 = vmatprep.subr.bf16.mxu0 %v3562_v5  ;;  %v3601_v40 = vld [vmem:[#allocation8 + $0x224] ss:$16 sps:$4 sm:$0xff]   ;;  %v3605_v46 = vld [vmem:[#allocation8 + $0x200] ss:$16 sps:$4 sm:$0xff]  }
  0x73   :  { %3169 = vmatmul.mubr.msk.bf16.vlgmr.msra.gmra.mxu1 %vm348_vm0, %v4284_v37  ;;  %v3616_v42 = vld [vmem:[#allocation8 + $0x144] ss:$16 sps:$4 sm:$0xff]   ;;  %v3611_v48 = vld [vmem:[#allocation8 + $0x3e0] ss:$16 sps:$4 sm:$0xff]  }
  0x74   :  { %484 = vmatpush1.bf16.msra.mxu1 %v3166_v63  ;;  %507 = vmatprep.mubr.bf16.mxu1 %v4212_v0  ;;  %v3572_v0 = vld [vmem:[#allocation8 + $0x20] ss:$16 sps:$4 sm:$0xff]   ;;  %v3607_v44 = vld [vmem:[#allocation8 + $0x204] ss:$16 sps:$4 sm:$0xff]  }
  0x75   :  { %485 = vmatprep.subr.bf16.mxu1 %v3159_v1  ;;  %2115 = vmatpush1.bf16.msra.mxu0 %v3560_v10  ;;  %v3613_v47 = vld [vmem:[#allocation8 + $0x3e4] ss:$16 sps:$4 sm:$0xff]   ;;  %v3617_v50 = vld [vmem:[#allocation8 + $0x3c0] ss:$16 sps:$4 sm:$0xff]  }
  0x76   :  { %2116 = vmatprep.subr.bf16.mxu0 %v3568_v11  ;;  %v3619_v49 = vld [vmem:[#allocation8 + $0x3c4] ss:$16 sps:$4 sm:$0xff]   ;;  %v3620_v52 = vld [vmem:[#allocation8 + $0x120] ss:$16 sps:$4 sm:$0xff]  }
  0x77   :  { %v3622_v51 = vld [vmem:[#allocation8 + $0x124] ss:$16 sps:$4 sm:$0xff]   ;;  %v3623_v54 = vld [vmem:[#allocation8 + $0x3a0] ss:$16 sps:$4 sm:$0xff]  }
  0x78   :  { %486 = vmatpush1.bf16.msra.mxu1 %v3158_v6  ;;  %v3625_v53 = vld [vmem:[#allocation8 + $0x3a4] ss:$16 sps:$4 sm:$0xff]   ;;  %v3626_v56 = vld [vmem:[#allocation8 + $0x100] ss:$16 sps:$4 sm:$0xff]   ;;  %v148_v6 = vlaneseq }
  0x79   :  { %487 = vmatprep.subr.bf16.mxu1 %v3151_v7  ;;  %2117 = vmatpush1.bf16.msra.mxu0 %v3566_v14  ;;  %v3628_v55 = vld [vmem:[#allocation8 + $0x104] ss:$16 sps:$4 sm:$0xff]   ;;  %v3629_v59 = vld [vmem:[#allocation8 + $0x380] ss:$16 sps:$4 sm:$0xff]  }
  0x7a   :  { %2118 = vmatprep.subr.bf16.mxu0 %v3574_v16  ;;  %v3631_v57 = vld [vmem:[#allocation8 + $0x384] ss:$16 sps:$4 sm:$0xff]   ;;  %v3632_v61 = vld [vmem:[#allocation8 + $0x360] ss:$16 sps:$4 sm:$0xff]   ;;  %v4296_v7 = vshrl.u32 %v148_v6, 7 }
  0x7b   :  { %v3637_v58 = vld [vmem:[#allocation8 + $0x4e4] ss:$16 sps:$4 sm:$0xff]   ;;  %v3638_v63 = vld [vmem:[#allocation8 + $0x340] ss:$16 sps:$4 sm:$0xff]  }
  0x7c   :  { %488 = vmatpush1.bf16.msra.mxu1 %v3150_v12  ;;  %v3634_v60 = vld [vmem:[#allocation8 + $0x364] ss:$16 sps:$4 sm:$0xff]   ;;  %v3644_v2 = vld [vmem:[#allocation8 + $0x320] ss:$16 sps:$4 sm:$0xff]   ;;  %v4299_v8 = vsub.s32 0, %v4296_v7  ;;  %v4304_v10 = vsub.s32 1, %v4296_v7 }
  0x7d   :  { %489 = vmatprep.subr.bf16.mxu1 %v3143_v13  ;;  %2119 = vmatpush1.bf16.msra.mxu0 %v3572_v0  ;;  %v3640_v62 = vld [vmem:[#allocation8 + $0x344] ss:$16 sps:$4 sm:$0xff]   ;;  %v3650_v4 = vld [vmem:[#allocation8 + $0x300] ss:$16 sps:$4 sm:$0xff]  }
  0x7e   :  { %2120 = vmatprep.subr.bf16.mxu0 %v3580_v18  ;;  %v3646_v1 = vld [vmem:[#allocation8 + $0x324] ss:$16 sps:$4 sm:$0xff]   ;;  %v151_v11 = vrot.slane %v4301_v9, %v4299_v8  ;;  %v155_v12 = vrot.slane %v4301_v9, %v4304_v10  ;;  %v3671_v6 = vld [vmem:[#allocation8 + $0x6a0] ss:$16 sps:$4 sm:$0xff]  }
  0x7f   :  { %v3652_v3 = vld [vmem:[#allocation8 + $0x304] ss:$16 sps:$4 sm:$0xff]  }
  0x80   :  { %490 = vmatpush1.bf16.msra.mxu1 %v3142_v17  ;;  %v3661_v5 = vld [vmem:[#allocation8 + $0x6e4] ss:$16 sps:$4 sm:$0xff]  }
  0x81   :  { %2147 = vmatprep.subr.bf16.mxu1 %v3565_v15  ;;  %2121 = vmatpush1.bf16.msra.mxu0 %v3578_v21  ;;  %v170_v15 = vsub.s32 5, %v4296_v7 }
  0x82   :  { %2122 = vmatprep.subr.bf16.mxu0 %v3586_v22 }
  0x83   :  { %3171 = vmatmul.mubr.msk.bf16.vlgmr.msra.gmra.mxu1 %vm348_vm0, %v4284_v37  ;;  %v3602_v37 = vld [vmem:[#allocation8 + $0x180] ss:$16 sps:$4 sm:$0xff]  }
  0x84   :  { %2148 = vmatpush1.bf16.msra.mxu1 %v3563_v19 }
  0x85   :  { %2149 = vmatprep.subr.bf16.mxu1 %v3571_v20  ;;  %2123 = vmatpush2.bf16.msra.mxu0 %v3584_v25  ;;  %v171_v20 = vrot.slane %v4301_v9, %v170_v15 }
  0x86   :  { %2124 = vmatprep.subr.bf16.mxu0 %v3592_v26  ;;  %v3635_v26 = vld [vmem:[#allocation8 + $0x4e0] ss:$16 sps:$4 sm:$0xff]  }
  0x88   :  { %2150 = vmatpush1.bf16.msra.mxu1 %v3569_v23 }
  0x89   :  { %2151 = vmatprep.subr.bf16.mxu1 %v3577_v24  ;;  %2125 = vmatpush2.bf16.msra.mxu0 %v3590_v29  ;;  %v3643_v29 = vld [vmem:[#allocation8 + $0x4c4] ss:$16 sps:$4 sm:$0xff]  }
  0x8a   :  { %2126 = vmatprep.subr.bf16.mxu0 %v3598_v30  ;;  %v158_v30 = vsub.s32 2, %v4296_v7 }
  0x8c   :  { %2152 = vmatpush1.bf16.msra.mxu1 %v3575_v27 }
  0x8d   :  { %2153 = vmatprep.subr.bf16.mxu1 %v3583_v28  ;;  %2127 = vmatpush2.bf16.msra.mxu0 %v3596_v33  ;;  %v162_v33 = vsub.s32 3, %v4296_v7 }
  0x8e   :  { %2128 = vmatprep.subr.bf16.mxu0 %v3604_v34 }
  0x90   :  { %2154 = vmatpush1.bf16.msra.mxu1 %v3581_v31 }
  0x91   :  { %2155 = vmatprep.subr.bf16.mxu1 %v3589_v32  ;;  %2129 = vmatpush2.bf16.msra.mxu0 %v3602_v37  ;;  %v159_v37 = vrot.slane %v4301_v9, %v158_v30 }
  0x92   :  { %2130 = vmatprep.subr.bf16.mxu0 %v3610_v38  ;;  %v3649_v38 = vld [vmem:[#allocation8 + $0x4a4] ss:$16 sps:$4 sm:$0xff]  }
  0x94   :  { %2156 = vmatpush1.bf16.msra.mxu1 %v3587_v35  ;;  %v3641_v35 = vld [vmem:[#allocation8 + $0x4c0] ss:$16 sps:$4 sm:$0xff]  }
  0x95   :  { %2157 = vmatprep.subr.bf16.mxu1 %v3595_v36  ;;  %2131 = vmatpush2.bf16.msra.mxu0 %v3608_v41  ;;  %v163_v41 = vrot.slane %v4301_v9, %v162_v33 }
  0x96   :  { %2132 = vmatprep.subr.bf16.mxu0 %v3616_v42 }
  0x98   :  { %2158 = vmatpush1.bf16.msra.mxu1 %v3593_v39 }
  0x99   :  { %2159 = vmatprep.subr.bf16.mxu1 %v3601_v40  ;;  %2133 = vmatpush2.bf16.msra.mxu0 %v3614_v45  ;;  %v3655_v45 = vld [vmem:[#allocation8 + $0x484] ss:$16 sps:$4 sm:$0xff]  }
  0x9a   :  { %2134 = vmatprep.subr.bf16.mxu0 %v3622_v51 }
  0x9c   :  { %2160 = vmatpush1.bf16.msra.mxu1 %v3599_v43  ;;  %v3647_v43 = vld [vmem:[#allocation8 + $0x4a0] ss:$16 sps:$4 sm:$0xff]  }
  0x9d   :  { %2161 = vmatprep.subr.bf16.mxu1 %v3607_v44  ;;  %2135 = vmatpush2.bf16.msra.mxu0 %v3620_v52  ;;  %v3658_v52 = vld [vmem:[#allocation8 + $0x464] ss:$16 sps:$4 sm:$0xff]  }
  0x9e   :  { %2136 = vmatprep.subr.bf16.mxu0 %v3628_v55 }
  0xa0   :  { %2162 = vmatpush1.bf16.msra.mxu1 %v3605_v46 }
  0xa1   :  { %2163 = vmatprep.subr.bf16.mxu1 %v3613_v47  ;;  %2137 = vmatpush2.bf16.msra.mxu0 %v3626_v56 }
  0xa2   :  { %2188 = vmatprep.subr.bf16.mxu0 %v3637_v58  ;;  %v3659_v58 = vld [vmem:[#allocation8 + $0x6e0] ss:$16 sps:$4 sm:$0xff]  }
  0xa4   :  { %2164 = vmatpush2.bf16.msra.mxu1 %v3611_v48 }
  0xa5   :  { %2165 = vmatprep.subr.bf16.mxu1 %v3619_v49 }
  0xa8   :  { %2166 = vmatpush2.bf16.msra.mxu1 %v3617_v50  ;;  %v3653_v50 = vld [vmem:[#allocation8 + $0x480] ss:$16 sps:$4 sm:$0xff]  }
  0xa9   :  { %2167 = vmatprep.subr.bf16.mxu1 %v3625_v53 }
  0xac   :  { %2168 = vmatpush2.bf16.msra.mxu1 %v3623_v54 }
  0xad   :  { %2169 = vmatprep.subr.bf16.mxu1 %v3631_v57  ;;  %v3656_v57 = vld [vmem:[#allocation8 + $0x460] ss:$16 sps:$4 sm:$0xff]  }
  0xb0   :  { %2170 = vmatpush2.bf16.msra.mxu1 %v3629_v59 }
  0xb1   :  { %2171 = vmatprep.subr.bf16.mxu1 %v3634_v60  ;;  %v3664_v60 = vld [vmem:[#allocation8 + $0x444] ss:$16 sps:$4 sm:$0xff]  }
  0xb4   :  { %2172 = vmatpush2.bf16.msra.mxu1 %v3632_v61  ;;  %v3667_v61 = vld [vmem:[#allocation8 + $0x6c4] ss:$16 sps:$4 sm:$0xff]  }
  0xb5   :  { %2173 = vmatprep.subr.bf16.mxu1 %v3640_v62  ;;  %v178_v62 = vsub.s32 7, %v4296_v7 }
  0xb8   :  { %2174 = vmatpush2.bf16.msra.mxu1 %v3638_v63  ;;  %v3662_v63 = vld [vmem:[#allocation8 + $0x440] ss:$16 sps:$4 sm:$0xff]  }
  0xb9   :  { %2175 = vmatprep.subr.bf16.mxu1 %v3646_v1  ;;  %v3665_v1 = vld [vmem:[#allocation8 + $0x6c0] ss:$16 sps:$4 sm:$0xff]  }
  0xbc   :  { %2176 = vmatpush2.bf16.msra.mxu1 %v3644_v2  ;;  %v3670_v2 = vld [vmem:[#allocation8 + $0x424] ss:$16 sps:$4 sm:$0xff]  }
  0xbd   :  { %2177 = vmatprep.subr.bf16.mxu1 %v3652_v3  ;;  %v3673_v3 = vld [vmem:[#allocation8 + $0x6a4] ss:$16 sps:$4 sm:$0xff]  }
  0xc0   :  { %2178 = vmatpush2.bf16.msra.mxu1 %v3650_v4  ;;  %v179_v4 = vrot.slane %v4301_v9, %v178_v62  ;;  %v3724_v62 = vld [vmem:[#allocation8 + $0x504] ss:$16 sps:$4 sm:$0xff]  }
  0xc1   :  { %2229 = vmatprep.subr.bf16.mxu1 %v3661_v5  ;;  %v3668_v5 = vld [vmem:[#allocation8 + $0x420] ss:$16 sps:$4 sm:$0xff]  }
 0x123   :  { %v386_v13 = vpop.f32.mrf.mxu1  ;;  %v4312_v23 = vpop.f32.mrf.mxu0 }
 0x124   :  { %v387_v14 = vadd.f32 %v386_v13, %v151_v11  ;;  %v3679_v13 = vld [vmem:[#allocation8 + $0x684] ss:$16 sps:$4 sm:$0xff]  }
 0x125   :  { %v388_v16 = vpop.f32.mrf.mxu1  ;;  %v470_v27 = vpop.f32.mrf.mxu0 }
 0x126   :  { %vm516_vm1 = vcmp.ge.f32.partialorder %v387_v14, 0.0  ;;  %v524_v17 = vmul.f32 0.01, %v387_v14  ;;  %v389_v0 = vadd.f32 %v388_v16, %v155_v12  ;;  %v471_v31 = vadd.f32 %v470_v27, %v171_v20  ;;  %v3676_v12 = vld [vmem:[#allocation8 + $0x404] ss:$16 sps:$4 sm:$0xff]  }
 0x127   :  { %v390_v18 = vpop.f32.mrf.mxu1  ;;  %v472_v32 = vpop.f32.mrf.mxu0  ;;  %v3674_v16 = vld [vmem:[#allocation8 + $0x400] ss:$16 sps:$4 sm:$0xff]  }
 0x128   :  { %vm517_vm2 = vcmp.ge.f32.partialorder %v389_v0, 0.0  ;;  %v525_v19 = vmul.f32 0.01, %v389_v0  ;;  %v532_v21 = vsel %vm516_vm1, %v387_v14, %v524_v17  ;;  %vm521_vm3 = vcmp.ge.f32.partialorder %v471_v31, 0.0  ;;  %v3677_v17 = vld [vmem:[#allocation8 + $0x680] ss:$16 sps:$4 sm:$0xff]  }
 0x129   :  { %v391_v22 = vpop.f32.mrf.mxu1  ;;  %v4316_v28 = vpack.c.bf16 %v532_v21, %v532_v21  ;;  %v529_v34 = vmul.f32 0.01, %v471_v31  ;;  %v473_v36 = vpop.f32.mrf.mxu0  ;;  %v3686_v32 = vld [vmem:[#allocation8 + $0x5c0] ss:$16 sps:$4 sm:$0xff]  }
 0x12a   :  { %v533_v24 = vsel %vm517_vm2, %v389_v0, %v525_v19  ;;  %v3682_v0 = vld [vmem:[#allocation8 + $0x5e4] ss:$16 sps:$4 sm:$0xff]  }
 0x12b   :  { %v4314_v25 = vpack.c.bf16 %v533_v24, %v533_v24  ;;  %v537_v39 = vsel %vm521_vm3, %v471_v31, %v529_v34  ;;  %v3685_v19 = vld [vmem:[#allocation8 + $0x664] ss:$16 sps:$4 sm:$0xff]   ;;  %v3680_v24 = vld [vmem:[#allocation8 + $0x5e0] ss:$16 sps:$4 sm:$0xff]  }
 0x12c   :  { %v4325_v40 = vpack.c.bf16 %v537_v39, %v537_v39  ;;  %v3691_v31 = vld [vmem:[#allocation8 + $0x644] ss:$16 sps:$4 sm:$0xff]   ;;  %v3689_v34 = vld [vmem:[#allocation8 + $0x640] ss:$16 sps:$4 sm:$0xff]  }
 0x12d   :  { %2138 = vmatprep.mubr.bf16.mxu0 %v4314_v25  ;;  %v3697_v36 = vld [vmem:[#allocation8 + $0x624] ss:$16 sps:$4 sm:$0xff]  }
 0x12e   :  { %2139 = vmatmul.mubr.bf16.vlgmr.msra.gmra.mxu0 %v4316_v28  ;;  %v3700_v39 = vld [vmem:[#allocation8 + $0x584] ss:$16 sps:$4 sm:$0xff]  }
 0x12f   :  { %2189 = vmatpush1.bf16.msra.mxu0 %v3635_v26  ;;  %2220 = vmatprep.mubr.bf16.mxu0 %v4325_v40  ;;  %v3683_v26 = vld [vmem:[#allocation8 + $0x660] ss:$16 sps:$4 sm:$0xff]  }
 0x130   :  { %2190 = vmatprep.subr.bf16.mxu0 %v3643_v29  ;;  %v3688_v29 = vld [vmem:[#allocation8 + $0x5c4] ss:$16 sps:$4 sm:$0xff]  }
 0x133   :  { %2191 = vmatpush1.bf16.msra.mxu0 %v3641_v35  ;;  %v427_v42 = vpop.f32.mrf.mxu1  ;;  %v3694_v35 = vld [vmem:[#allocation8 + $0x5a4] ss:$16 sps:$4 sm:$0xff]  }
 0x134   :  { %v428_v44 = vadd.f32 %v427_v42, %v159_v37  ;;  %2192 = vmatprep.subr.bf16.mxu0 %v3649_v38  ;;  %v3692_v37 = vld [vmem:[#allocation8 + $0x5a0] ss:$16 sps:$4 sm:$0xff]  }
 0x135   :  { %v429_v46 = vpop.f32.mrf.mxu1  ;;  %v3695_v38 = vld [vmem:[#allocation8 + $0x620] ss:$16 sps:$4 sm:$0xff]  }
 0x136   :  { %vm518_vm4 = vcmp.ge.f32.partialorder %v428_v44, 0.0  ;;  %v526_v47 = vmul.f32 0.01, %v428_v44  ;;  %v430_v48 = vadd.f32 %v429_v46, %v163_v41  ;;  %v3703_v41 = vld [vmem:[#allocation8 + $0x604] ss:$16 sps:$4 sm:$0xff]  }
 0x137   :  { %2193 = vmatpush1.bf16.msra.mxu0 %v3647_v43  ;;  %v431_v49 = vpop.f32.mrf.mxu1  ;;  %v3698_v42 = vld [vmem:[#allocation8 + $0x580] ss:$16 sps:$4 sm:$0xff]   ;;  %v3709_v46 = vld [vmem:[#allocation8 + $0x7e4] ss:$16 sps:$4 sm:$0xff]  }
 0x138   :  { %vm519_vm5 = vcmp.ge.f32.partialorder %v430_v48, 0.0  ;;  %v527_v51 = vmul.f32 0.01, %v430_v48  ;;  %2194 = vmatprep.subr.bf16.mxu0 %v3655_v45  ;;  %v534_v53 = vsel %vm518_vm4, %v428_v44, %v526_v47  ;;  %v3701_v43 = vld [vmem:[#allocation8 + $0x600] ss:$16 sps:$4 sm:$0xff]   ;;  %v166_v44 = vsub.s32 4, %v4296_v7 }
 0x139   :  { %v432_v54 = vpop.f32.mrf.mxu1  ;;  %v4333_v59 = vpack.c.bf16 %v534_v53, %v534_v53  ;;  %v3706_v45 = vld [vmem:[#allocation8 + $0x564] ss:$16 sps:$4 sm:$0xff]   ;;  %v3704_v47 = vld [vmem:[#allocation8 + $0x560] ss:$16 sps:$4 sm:$0xff]  }
 0x13a   :  { %v535_v55 = vsel %vm519_vm5, %v430_v48, %v527_v51  ;;  %v3707_v48 = vld [vmem:[#allocation8 + $0x7e0] ss:$16 sps:$4 sm:$0xff]   ;;  %v167_v49 = vrot.slane %v4301_v9, %v166_v44  ;;  %v3715_v51 = vld [vmem:[#allocation8 + $0x7c4] ss:$16 sps:$4 sm:$0xff]   ;;  %v3764_v44 = vld [vmem:[#allocation8 + $0x28] ss:$16 sps:$4 sm:$0xff]  }
 0x13b   :  { %2195 = vmatpush1.bf16.msra.mxu0 %v3653_v50  ;;  %v4331_v56 = vpack.c.bf16 %v535_v55, %v535_v55  ;;  %v3712_v50 = vld [vmem:[#allocation8 + $0x544] ss:$16 sps:$4 sm:$0xff]   ;;  %v3713_v53 = vld [vmem:[#allocation8 + $0x7c0] ss:$16 sps:$4 sm:$0xff]  }
 0x13c   :  { %2196 = vmatprep.subr.bf16.mxu0 %v3658_v52  ;;  %v3710_v52 = vld [vmem:[#allocation8 + $0x540] ss:$16 sps:$4 sm:$0xff]   ;;  %v469_v54 = vadd.f32 %v4312_v23, %v167_v49  ;;  %v3718_v55 = vld [vmem:[#allocation8 + $0x524] ss:$16 sps:$4 sm:$0xff]   ;;  %v3773_v49 = vld [vmem:[#allocation8 + $0x288] ss:$16 sps:$4 sm:$0xff]  }
 0x13d   :  { %2179 = vmatprep.mubr.bf16.mxu1 %v4331_v56  ;;  %v3730_v23 = vld [vmem:[#allocation8 + $0x764] ss:$16 sps:$4 sm:$0xff]  }
 0x13e   :  { %2180 = vmatmul.mubr.bf16.vlgmr.msra.gmra.mxu1 %v4333_v59  ;;  %vm520_vm7 = vcmp.ge.f32.partialorder %v469_v54, 0.0 }
 0x13f   :  { %2197 = vmatpush1.bf16.msra.mxu0 %v3656_v57  ;;  %2230 = vmatpush1.bf16.msra.mxu1 %v3659_v58  ;;  %v3721_v57 = vld [vmem:[#allocation8 + $0x7a4] ss:$16 sps:$4 sm:$0xff]   ;;  %v528_v58 = vmul.f32 0.01, %v469_v54 }
 0x140   :  { %2198 = vmatprep.subr.bf16.mxu0 %v3664_v60  ;;  %2231 = vmatprep.subr.bf16.mxu1 %v3667_v61  ;;  %v3716_v60 = vld [vmem:[#allocation8 + $0x520] ss:$16 sps:$4 sm:$0xff]  }
 0x141   :  { %v3719_v61 = vld [vmem:[#allocation8 + $0x7a0] ss:$16 sps:$4 sm:$0xff]  }
 0x143   :  { %2199 = vmatpush1.bf16.msra.mxu0 %v3662_v63  ;;  %2232 = vmatpush1.bf16.msra.mxu1 %v3665_v1  ;;  %v4339_v11 = vpop.f32.mrf.mxu1  ;;  %v3727_v63 = vld [vmem:[#allocation8 + $0x784] ss:$16 sps:$4 sm:$0xff]   ;;  %v536_v1 = vsel %vm520_vm7, %v469_v54, %v528_v58  ;;  %v3787_v54 = vld [vmem:[#allocation8 + $0x24c] ss:$16 sps:$4 sm:$0xff]  }
 0x144   :  { %2200 = vmatprep.subr.bf16.mxu0 %v3670_v2  ;;  %2233 = vmatprep.subr.bf16.mxu1 %v3673_v3  ;;  %v3722_v2 = vld [vmem:[#allocation8 + $0x500] ss:$16 sps:$4 sm:$0xff]   ;;  %v3790_v58 = vld [vmem:[#allocation8 + $0x1ac] ss:$16 sps:$4 sm:$0xff]  }
 0x145   :  { %v511_v14 = vpop.f32.mrf.mxu1  ;;  %v3725_v3 = vld [vmem:[#allocation8 + $0x780] ss:$16 sps:$4 sm:$0xff]  }
 0x146   :  { %v512_v15 = vadd.f32 %v511_v14, %v179_v4  ;;  %v3733_v4 = vld [vmem:[#allocation8 + $0xec] ss:$16 sps:$4 sm:$0xff]   ;;  %v3736_v14 = vld [vmem:[#allocation8 + $0x744] ss:$16 sps:$4 sm:$0xff]  }
 0x147   :  { %2201 = vmatpush1.bf16.msra.mxu0 %v3668_v5  ;;  %2234 = vmatpush1.bf16.msra.mxu1 %v3671_v6  ;;  %v513_v18 = vpop.f32.mrf.mxu1  ;;  %v174_v5 = vsub.s32 6, %v4296_v7  ;;  %v4348_v6 = vpack.c.bf16 %v536_v1, %v536_v1  ;;  %v3799_v1 = vld [vmem:[#allocation8 + $0x20c] ss:$16 sps:$4 sm:$0xff]  }
 0x148   :  { %2202 = vmatprep.subr.bf16.mxu0 %v3676_v12  ;;  %2235 = vmatprep.subr.bf16.mxu1 %v3679_v13  ;;  %vm523_vm6 = vcmp.ge.f32.partialorder %v512_v15, 0.0  ;;  %v531_v20 = vmul.f32 0.01, %v512_v15  ;;  %v3728_v12 = vld [vmem:[#allocation8 + $0x760] ss:$16 sps:$4 sm:$0xff]  }
 0x149   :  { %v514_v21 = vpop.f32.mrf.mxu1  ;;  %v3731_v13 = vld [vmem:[#allocation8 + $0xe8] ss:$16 sps:$4 sm:$0xff]   ;;  %v3742_v18 = vld [vmem:[#allocation8 + $0x724] ss:$16 sps:$4 sm:$0xff]  }
 0x14a   :  { %v539_v22 = vsel %vm523_vm6, %v512_v15, %v531_v20  ;;  %v175_v15 = vrot.slane %v4301_v9, %v174_v5  ;;  %v3740_v21 = vld [vmem:[#allocation8 + $0x720] ss:$16 sps:$4 sm:$0xff]   ;;  %v3748_v9 = vld [vmem:[#allocation8 + $0x704] ss:$16 sps:$4 sm:$0xff]   ;;  %v3800_v5 = vld [vmem:[#allocation8 + $0x168] ss:$16 sps:$4 sm:$0xff]  }
 0x14b   :  { %2203 = vmatpush1.bf16.msra.mxu0 %v3674_v16  ;;  %2236 = vmatpush1.bf16.msra.mxu1 %v3677_v17  ;;  %v4341_v27 = vpack.c.bf16 %v539_v22, %v539_v22  ;;  %v3739_v16 = vld [vmem:[#allocation8 + $0xcc] ss:$16 sps:$4 sm:$0xff]   ;;  %v3734_v17 = vld [vmem:[#allocation8 + $0x740] ss:$16 sps:$4 sm:$0xff]   ;;  %v3743_v22 = vld [vmem:[#allocation8 + $0xa8] ss:$16 sps:$4 sm:$0xff]  }
 0x14c   :  { %2204 = vmatprep.subr.bf16.mxu0 %v3682_v0  ;;  %2237 = vmatprep.subr.bf16.mxu1 %v3685_v19  ;;  %v3737_v0 = vld [vmem:[#allocation8 + $0xc8] ss:$16 sps:$4 sm:$0xff]   ;;  %v3745_v19 = vld [vmem:[#allocation8 + $0xac] ss:$16 sps:$4 sm:$0xff]   ;;  %v510_v20 = vadd.f32 %v4339_v11, %v175_v15 }
 0x14d   :  { %2261 = vmatprep.mubr.bf16.mxu1 %v4341_v27  ;;  %v3806_v15 = vld [vmem:[#allocation8 + $0x148] ss:$16 sps:$4 sm:$0xff]  }
 0x14e   :  { %vm522_vm8 = vcmp.ge.f32.partialorder %v510_v20, 0.0 }
 0x14f   :  { %2205 = vmatpush2.bf16.msra.mxu0 %v3680_v24  ;;  %2238 = vmatpush1.bf16.msra.mxu1 %v3683_v26  ;;  %v3751_v24 = vld [vmem:[#allocation8 + $0x8c] ss:$16 sps:$4 sm:$0xff]   ;;  %v530_v26 = vmul.f32 0.01, %v510_v20 }
 0x150   :  { %2206 = vmatprep.subr.bf16.mxu0 %v3688_v29  ;;  %2239 = vmatprep.subr.bf16.mxu1 %v3691_v31  ;;  %v3746_v29 = vld [vmem:[#allocation8 + $0x700] ss:$16 sps:$4 sm:$0xff]   ;;  %v3754_v31 = vld [vmem:[#allocation8 + $0x6c] ss:$16 sps:$4 sm:$0xff]  }
 0x151   :  { %v538_v11 = vsel %vm522_vm8, %v510_v20, %v530_v26  ;;  %v3820_v20 = vld [vmem:[#allocation8 + $0x10c] ss:$16 sps:$4 sm:$0xff]  }
 0x152   :  { %v3829_v26 = vld [vmem:[#allocation8 + $0x4ec] ss:$16 sps:$4 sm:$0xff]  }
 0x153   :  { %2207 = vmatpush2.bf16.msra.mxu0 %v3686_v32  ;;  %2240 = vmatpush1.bf16.msra.mxu1 %v3689_v34  ;;  %v3757_v32 = vld [vmem:[#allocation8 + $0x2ec] ss:$16 sps:$4 sm:$0xff]   ;;  %v3752_v34 = vld [vmem:[#allocation8 + $0x68] ss:$16 sps:$4 sm:$0xff]  }
 0x154   :  { %2208 = vmatprep.subr.bf16.mxu0 %v3694_v35  ;;  %2241 = vmatprep.subr.bf16.mxu1 %v3697_v36  ;;  %v3755_v35 = vld [vmem:[#allocation8 + $0x2e8] ss:$16 sps:$4 sm:$0xff]   ;;  %v4354_v36 = vpack.c.bf16 %v538_v11, %v538_v11 }
 0x155   :  { %v3830_v11 = vld [vmem:[#allocation8 + $0x348] ss:$16 sps:$4 sm:$0xff]  }
 0x157   :  { %2209 = vmatpush2.bf16.msra.mxu0 %v3692_v37  ;;  %2242 = vmatpush1.bf16.msra.mxu1 %v3695_v38  ;;  %v3760_v37 = vld [vmem:[#allocation8 + $0x4c] ss:$16 sps:$4 sm:$0xff]  }
 0x158   :  { %2210 = vmatprep.subr.bf16.mxu0 %v3700_v39  ;;  %2243 = vmatprep.subr.bf16.mxu1 %v3703_v41  ;;  %v3763_v38 = vld [vmem:[#allocation8 + $0x2cc] ss:$16 sps:$4 sm:$0xff]   ;;  %v3758_v39 = vld [vmem:[#allocation8 + $0x48] ss:$16 sps:$4 sm:$0xff]  }
 0x159   :  { %v3761_v41 = vld [vmem:[#allocation8 + $0x2c8] ss:$16 sps:$4 sm:$0xff]  }
 0x15b   :  { %2211 = vmatpush2.bf16.msra.mxu0 %v3698_v42  ;;  %2244 = vmatpush1.bf16.msra.mxu1 %v3701_v43  ;;  %v3766_v42 = vld [vmem:[#allocation8 + $0x2c] ss:$16 sps:$4 sm:$0xff]  }
 0x15c   :  { %2212 = vmatprep.subr.bf16.mxu0 %v3706_v45  ;;  %2245 = vmatprep.subr.bf16.mxu1 %v3709_v46  ;;  %v3769_v43 = vld [vmem:[#allocation8 + $0x2ac] ss:$16 sps:$4 sm:$0xff]   ;;  %v3767_v45 = vld [vmem:[#allocation8 + $0x2a8] ss:$16 sps:$4 sm:$0xff]  }
 0x15d   :  { %v3772_v46 = vld [vmem:[#allocation8 + $0xc] ss:$16 sps:$4 sm:$0xff]  }
 0x15f   :  { %2213 = vmatpush2.bf16.msra.mxu0 %v3704_v47  ;;  %2246 = vmatpush2.bf16.msra.mxu1 %v3707_v48  ;;  %v3775_v47 = vld [vmem:[#allocation8 + $0x28c] ss:$16 sps:$4 sm:$0xff]   ;;  %v3770_v48 = vld [vmem:[#allocation8 + $0x8] ss:$16 sps:$4 sm:$0xff]  }
 0x160   :  { %2214 = vmatprep.subr.bf16.mxu0 %v3712_v50  ;;  %2247 = vmatprep.subr.bf16.mxu1 %v3715_v51  ;;  %v3778_v50 = vld [vmem:[#allocation8 + $0x1ec] ss:$16 sps:$4 sm:$0xff]   ;;  %v3776_v51 = vld [vmem:[#allocation8 + $0x1e8] ss:$16 sps:$4 sm:$0xff]  }
 0x163   :  { %2215 = vmatpush2.bf16.msra.mxu0 %v3710_v52  ;;  %2248 = vmatpush2.bf16.msra.mxu1 %v3713_v53  ;;  %v3779_v52 = vld [vmem:[#allocation8 + $0x268] ss:$16 sps:$4 sm:$0xff]   ;;  %v3784_v53 = vld [vmem:[#allocation8 + $0x1cc] ss:$16 sps:$4 sm:$0xff]  }
 0x164   :  { %2216 = vmatprep.subr.bf16.mxu0 %v3718_v55  ;;  %2249 = vmatprep.subr.bf16.mxu1 %v3721_v57  ;;  %v3782_v55 = vld [vmem:[#allocation8 + $0x1c8] ss:$16 sps:$4 sm:$0xff]  }
 0x165   :  { %v3785_v57 = vld [vmem:[#allocation8 + $0x248] ss:$16 sps:$4 sm:$0xff]  }
 0x167   :  { %2217 = vmatpush2.bf16.msra.mxu0 %v3716_v60  ;;  %2250 = vmatpush2.bf16.msra.mxu1 %v3719_v61  ;;  %v3793_v60 = vld [vmem:[#allocation8 + $0x22c] ss:$16 sps:$4 sm:$0xff]   ;;  %v3788_v61 = vld [vmem:[#allocation8 + $0x1a8] ss:$16 sps:$4 sm:$0xff]  }
 0x168   :  { %2218 = vmatprep.subr.bf16.mxu0 %v3724_v62  ;;  %2251 = vmatprep.subr.bf16.mxu1 %v3727_v63  ;;  %v3791_v62 = vld [vmem:[#allocation8 + $0x228] ss:$16 sps:$4 sm:$0xff]   ;;  %v3796_v63 = vld [vmem:[#allocation8 + $0x18c] ss:$16 sps:$4 sm:$0xff]  }
 0x16b   :  { %2219 = vmatpush2.bf16.msra.mxu0 %v3722_v2  ;;  %2252 = vmatpush2.bf16.msra.mxu1 %v3725_v3  ;;  %v3794_v2 = vld [vmem:[#allocation8 + $0x188] ss:$16 sps:$4 sm:$0xff]  }
 0x16c   :  { %2253 = vmatprep.subr.bf16.mxu1 %v3730_v23  ;;  %2270 = vmatprep.subr.bf16.mxu0 %v3733_v4  ;;  %v3797_v3 = vld [vmem:[#allocation8 + $0x208] ss:$16 sps:$4 sm:$0xff]   ;;  %v3802_v23 = vld [vmem:[#allocation8 + $0x16c] ss:$16 sps:$4 sm:$0xff]  }
 0x16d   :  { %v3805_v4 = vld [vmem:[#allocation8 + $0x3ec] ss:$16 sps:$4 sm:$0xff]  }
 0x16e   :  { %2221 = vmatmul.mubr.bf16.vlgmr.msra.gmra.mxu0 %v4348_v6 }
 0x16f   :  { %2254 = vmatpush2.bf16.msra.mxu1 %v3728_v12  ;;  %2271 = vmatpush1.bf16.msra.mxu0 %v3731_v13  ;;  %v3803_v12 = vld [vmem:[#allocation8 + $0x3e8] ss:$16 sps:$4 sm:$0xff]   ;;  %v3808_v13 = vld [vmem:[#allocation8 + $0x14c] ss:$16 sps:$4 sm:$0xff]  }
 0x170   :  { %2302 = vmatprep.mubr.bf16.mxu0 %v4314_v25  ;;  %2255 = vmatprep.subr.bf16.mxu1 %v3736_v14  ;;  %v3749_v25 = vld [vmem:[#allocation8 + $0x88] ss:$16 sps:$4 sm:$0xff]   ;;  %v3811_v14 = vld [vmem:[#allocation8 + $0x3cc] ss:$16 sps:$4 sm:$0xff]  }
 0x171   :  { %2272 = vmatprep.subr.bf16.mxu0 %v3739_v16  ;;  %v3809_v16 = vld [vmem:[#allocation8 + $0x3c8] ss:$16 sps:$4 sm:$0xff]  }
 0x173   :  { %2256 = vmatpush2.bf16.msra.mxu1 %v3734_v17  ;;  %2273 = vmatpush1.bf16.msra.mxu0 %v3737_v0  ;;  %v3814_v17 = vld [vmem:[#allocation8 + $0x12c] ss:$16 sps:$4 sm:$0xff]  }
 0x174   :  { %2257 = vmatprep.subr.bf16.mxu1 %v3742_v18  ;;  %2274 = vmatprep.subr.bf16.mxu0 %v3745_v19  ;;  %v3817_v0 = vld [vmem:[#allocation8 + $0x3ac] ss:$16 sps:$4 sm:$0xff]   ;;  %v3812_v18 = vld [vmem:[#allocation8 + $0x128] ss:$16 sps:$4 sm:$0xff]  }
 0x175   :  { %v3815_v19 = vld [vmem:[#allocation8 + $0x3a8] ss:$16 sps:$4 sm:$0xff]  }
 0x177   :  { %2258 = vmatpush2.bf16.msra.mxu1 %v3740_v21  ;;  %2275 = vmatpush1.bf16.msra.mxu0 %v3743_v22  ;;  %v3823_v21 = vld [vmem:[#allocation8 + $0x38c] ss:$16 sps:$4 sm:$0xff]   ;;  %v3818_v22 = vld [vmem:[#allocation8 + $0x108] ss:$16 sps:$4 sm:$0xff]  }
 0x178   :  { %2259 = vmatprep.subr.bf16.mxu1 %v3748_v9  ;;  %2276 = vmatprep.subr.bf16.mxu0 %v3751_v24  ;;  %v3821_v9 = vld [vmem:[#allocation8 + $0x388] ss:$16 sps:$4 sm:$0xff]   ;;  %v3826_v24 = vld [vmem:[#allocation8 + $0x36c] ss:$16 sps:$4 sm:$0xff]  }
 0x17b   :  { %2260 = vmatpush2.bf16.msra.mxu1 %v3746_v29  ;;  %2277 = vmatpush1.bf16.msra.mxu0 %v3749_v25  ;;  %v3824_v29 = vld [vmem:[#allocation8 + $0x368] ss:$16 sps:$4 sm:$0xff]  }
 0x17c   :  { %2278 = vmatprep.subr.bf16.mxu0 %v3754_v31  ;;  %2311 = vmatprep.subr.bf16.mxu1 %v3757_v32  ;;  %v3827_v25 = vld [vmem:[#allocation8 + $0x4e8] ss:$16 sps:$4 sm:$0xff]   ;;  %v3832_v31 = vld [vmem:[#allocation8 + $0x34c] ss:$16 sps:$4 sm:$0xff]  }
 0x17d   :  { %v3835_v32 = vld [vmem:[#allocation8 + $0x4cc] ss:$16 sps:$4 sm:$0xff]  }
 0x17e   :  { %2262 = vmatmul.mubr.bf16.vlgmr.msra.gmra.mxu1 %v4354_v36 }
 0x17f   :  { %2279 = vmatpush1.bf16.msra.mxu0 %v3752_v34  ;;  %2312 = vmatpush1.bf16.msra.mxu1 %v3755_v35  ;;  %v3833_v34 = vld [vmem:[#allocation8 + $0x4c8] ss:$16 sps:$4 sm:$0xff]   ;;  %v3838_v35 = vld [vmem:[#allocation8 + $0x32c] ss:$16 sps:$4 sm:$0xff]  }
 0x180   :  { %2343 = vmatprep.mubr.bf16.mxu1 %v4331_v56  ;;  %2280 = vmatprep.subr.bf16.mxu0 %v3760_v37  ;;  %v3781_v56 = vld [vmem:[#allocation8 + $0x26c] ss:$16 sps:$4 sm:$0xff]  }
 0x181   :  { %2313 = vmatprep.subr.bf16.mxu1 %v3763_v38  ;;  %v3841_v37 = vld [vmem:[#allocation8 + $0x4ac] ss:$16 sps:$4 sm:$0xff]   ;;  %v3836_v38 = vld [vmem:[#allocation8 + $0x328] ss:$16 sps:$4 sm:$0xff]  }
 0x183   :  { %2281 = vmatpush1.bf16.msra.mxu0 %v3758_v39  ;;  %2314 = vmatpush1.bf16.msra.mxu1 %v3761_v41  ;;  %v3839_v39 = vld [vmem:[#allocation8 + $0x4a8] ss:$16 sps:$4 sm:$0xff]   ;;  %v3844_v41 = vld [vmem:[#allocation8 + $0x30c] ss:$16 sps:$4 sm:$0xff]  }
 0x184   :  { %2282 = vmatprep.subr.bf16.mxu0 %v3766_v42  ;;  %2315 = vmatprep.subr.bf16.mxu1 %v3769_v43  ;;  %v3847_v42 = vld [vmem:[#allocation8 + $0x48c] ss:$16 sps:$4 sm:$0xff]   ;;  %v3845_v43 = vld [vmem:[#allocation8 + $0x488] ss:$16 sps:$4 sm:$0xff]  }
 0x187   :  { %2283 = vmatpush1.bf16.msra.mxu0 %v3764_v44  ;;  %2316 = vmatpush1.bf16.msra.mxu1 %v3767_v45  ;;  %v3850_v44 = vld [vmem:[#allocation8 + $0x46c] ss:$16 sps:$4 sm:$0xff]   ;;  %v3848_v45 = vld [vmem:[#allocation8 + $0x468] ss:$16 sps:$4 sm:$0xff]  }
 0x188   :  { %2284 = vmatprep.subr.bf16.mxu0 %v3772_v46  ;;  %2317 = vmatprep.subr.bf16.mxu1 %v3775_v47  ;;  %v3851_v46 = vld [vmem:[#allocation8 + $0x6e8] ss:$16 sps:$4 sm:$0xff]   ;;  %v3856_v47 = vld [vmem:[#allocation8 + $0x44c] ss:$16 sps:$4 sm:$0xff]  }
 0x18b   :  { %2285 = vmatpush1.bf16.msra.mxu0 %v3770_v48  ;;  %2318 = vmatpush1.bf16.msra.mxu1 %v3773_v49  ;;  %v3859_v48 = vld [vmem:[#allocation8 + $0x6cc] ss:$16 sps:$4 sm:$0xff]   ;;  %v3854_v49 = vld [vmem:[#allocation8 + $0x448] ss:$16 sps:$4 sm:$0xff]  }
 0x18c   :  { %2286 = vmatprep.subr.bf16.mxu0 %v3778_v50  ;;  %2319 = vmatprep.subr.bf16.mxu1 %v3781_v56  ;;  %v3857_v50 = vld [vmem:[#allocation8 + $0x6c8] ss:$16 sps:$4 sm:$0xff]   ;;  %v3862_v56 = vld [vmem:[#allocation8 + $0x42c] ss:$16 sps:$4 sm:$0xff]  }
 0x18f   :  { %2287 = vmatpush2.bf16.msra.mxu0 %v3776_v51  ;;  %2320 = vmatpush1.bf16.msra.mxu1 %v3779_v52  ;;  %v3865_v51 = vld [vmem:[#allocation8 + $0x6ac] ss:$16 sps:$4 sm:$0xff]   ;;  %v3860_v52 = vld [vmem:[#allocation8 + $0x428] ss:$16 sps:$4 sm:$0xff]  }
 0x190   :  { %2288 = vmatprep.subr.bf16.mxu0 %v3784_v53  ;;  %2321 = vmatprep.subr.bf16.mxu1 %v3787_v54  ;;  %v3863_v53 = vld [vmem:[#allocation8 + $0x6a8] ss:$16 sps:$4 sm:$0xff]   ;;  %v3868_v54 = vld [vmem:[#allocation8 + $0x40c] ss:$16 sps:$4 sm:$0xff]  }
 0x193   :  { %2289 = vmatpush2.bf16.msra.mxu0 %v3782_v55  ;;  %2322 = vmatpush1.bf16.msra.mxu1 %v3785_v57  ;;  %v3871_v55 = vld [vmem:[#allocation8 + $0x68c] ss:$16 sps:$4 sm:$0xff]   ;;  %v3869_v57 = vld [vmem:[#allocation8 + $0x688] ss:$16 sps:$4 sm:$0xff]  }
 0x194   :  { %2290 = vmatprep.subr.bf16.mxu0 %v3790_v58  ;;  %2323 = vmatprep.subr.bf16.mxu1 %v3793_v60  ;;  %v3874_v58 = vld [vmem:[#allocation8 + $0x5ec] ss:$16 sps:$4 sm:$0xff]   ;;  %v3872_v60 = vld [vmem:[#allocation8 + $0x5e8] ss:$16 sps:$4 sm:$0xff]  }
 0x197   :  { %2291 = vmatpush2.bf16.msra.mxu0 %v3788_v61  ;;  %2324 = vmatpush1.bf16.msra.mxu1 %v3791_v62  ;;  %v3875_v61 = vld [vmem:[#allocation8 + $0x668] ss:$16 sps:$4 sm:$0xff]   ;;  %v3880_v62 = vld [vmem:[#allocation8 + $0x5cc] ss:$16 sps:$4 sm:$0xff]  }
 0x198   :  { %2292 = vmatprep.subr.bf16.mxu0 %v3796_v63  ;;  %2325 = vmatprep.subr.bf16.mxu1 %v3799_v1  ;;  %v3883_v63 = vld [vmem:[#allocation8 + $0x64c] ss:$16 sps:$4 sm:$0xff]   ;;  %v3878_v1 = vld [vmem:[#allocation8 + $0x5c8] ss:$16 sps:$4 sm:$0xff]  }
 0x19b   :  { %2293 = vmatpush2.bf16.msra.mxu0 %v3794_v2  ;;  %2326 = vmatpush1.bf16.msra.mxu1 %v3797_v3  ;;  %v3881_v2 = vld [vmem:[#allocation8 + $0x648] ss:$16 sps:$4 sm:$0xff]   ;;  %v3886_v3 = vld [vmem:[#allocation8 + $0x5ac] ss:$16 sps:$4 sm:$0xff]  }
 0x19c   :  { %2294 = vmatprep.subr.bf16.mxu0 %v3802_v23  ;;  %2327 = vmatprep.subr.bf16.mxu1 %v3805_v4  ;;  %v3889_v23 = vld [vmem:[#allocation8 + $0x62c] ss:$16 sps:$4 sm:$0xff]   ;;  %v3884_v4 = vld [vmem:[#allocation8 + $0x5a8] ss:$16 sps:$4 sm:$0xff]  }
 0x19f   :  { %2295 = vmatpush2.bf16.msra.mxu0 %v3800_v5  ;;  %2328 = vmatpush2.bf16.msra.mxu1 %v3803_v12  ;;  %v3887_v5 = vld [vmem:[#allocation8 + $0x628] ss:$16 sps:$4 sm:$0xff]   ;;  %v3892_v12 = vld [vmem:[#allocation8 + $0x58c] ss:$16 sps:$4 sm:$0xff]  }
 0x1a0   :  { %2296 = vmatprep.subr.bf16.mxu0 %v3808_v13  ;;  %2329 = vmatprep.subr.bf16.mxu1 %v3811_v14  ;;  %v3895_v13 = vld [vmem:[#allocation8 + $0x60c] ss:$16 sps:$4 sm:$0xff]   ;;  %v3890_v14 = vld [vmem:[#allocation8 + $0x588] ss:$16 sps:$4 sm:$0xff]  }
 0x1a3   :  { %2297 = vmatpush2.bf16.msra.mxu0 %v3806_v15  ;;  %2330 = vmatpush2.bf16.msra.mxu1 %v3809_v16  ;;  %v3893_v15 = vld [vmem:[#allocation8 + $0x608] ss:$16 sps:$4 sm:$0xff]   ;;  %v3898_v16 = vld [vmem:[#allocation8 + $0x56c] ss:$16 sps:$4 sm:$0xff]  }
 0x1a4   :  { %2298 = vmatprep.subr.bf16.mxu0 %v3814_v17  ;;  %2331 = vmatprep.subr.bf16.mxu1 %v3817_v0  ;;  %v3901_v17 = vld [vmem:[#allocation8 + $0x7ec] ss:$16 sps:$4 sm:$0xff]   ;;  %v3896_v0 = vld [vmem:[#allocation8 + $0x568] ss:$16 sps:$4 sm:$0xff]  }
 0x1a7   :  { %2299 = vmatpush2.bf16.msra.mxu0 %v3812_v18  ;;  %2332 = vmatpush2.bf16.msra.mxu1 %v3815_v19  ;;  %v3899_v18 = vld [vmem:[#allocation8 + $0x7e8] ss:$16 sps:$4 sm:$0xff]   ;;  %v3904_v19 = vld [vmem:[#allocation8 + $0x54c] ss:$16 sps:$4 sm:$0xff]  }
 0x1a8   :  { %2300 = vmatprep.subr.bf16.mxu0 %v3820_v20  ;;  %2333 = vmatprep.subr.bf16.mxu1 %v3823_v21  ;;  %v3907_v20 = vld [vmem:[#allocation8 + $0x7cc] ss:$16 sps:$4 sm:$0xff]   ;;  %v3902_v21 = vld [vmem:[#allocation8 + $0x548] ss:$16 sps:$4 sm:$0xff]  }
 0x1ab   :  { %2301 = vmatpush2.bf16.msra.mxu0 %v3818_v22  ;;  %2334 = vmatpush2.bf16.msra.mxu1 %v3821_v9  ;;  %v3905_v22 = vld [vmem:[#allocation8 + $0x7c8] ss:$16 sps:$4 sm:$0xff]   ;;  %v3910_v9 = vld [vmem:[#allocation8 + $0x52c] ss:$16 sps:$4 sm:$0xff]  }
 0x1ac   :  { %2335 = vmatprep.subr.bf16.mxu1 %v3826_v24  ;;  %2352 = vmatprep.subr.bf16.mxu0 %v3829_v26  ;;  %v3913_v24 = vld [vmem:[#allocation8 + $0x7ac] ss:$16 sps:$4 sm:$0xff]   ;;  %v3908_v26 = vld [vmem:[#allocation8 + $0x528] ss:$16 sps:$4 sm:$0xff]  }
 0x1ae   :  { %2303 = vmatmul.mubr.bf16.vlgmr.msra.gmra.mxu0 %v4316_v28  ;;  %v3842_v28 = vld [vmem:[#allocation8 + $0x308] ss:$16 sps:$4 sm:$0xff]  }
 0x1af   :  { %2336 = vmatpush2.bf16.msra.mxu1 %v3824_v29  ;;  %2353 = vmatpush1.bf16.msra.mxu0 %v3827_v25  ;;  %v3911_v29 = vld [vmem:[#allocation8 + $0x7a8] ss:$16 sps:$4 sm:$0xff]   ;;  %v3916_v25 = vld [vmem:[#allocation8 + $0x50c] ss:$16 sps:$4 sm:$0xff]  }
 0x1b0   :  { %2384 = vmatprep.mubr.bf16.mxu0 %v4325_v40  ;;  %2337 = vmatprep.subr.bf16.mxu1 %v3832_v31  ;;  %v3853_v40 = vld [vmem:[#allocation8 + $0x6ec] ss:$16 sps:$4 sm:$0xff]  }
 0x1b1   :  { %2354 = vmatprep.subr.bf16.mxu0 %v3835_v32  ;;  %v3919_v31 = vld [vmem:[#allocation8 + $0x78c] ss:$16 sps:$4 sm:$0xff]   ;;  %v3914_v32 = vld [vmem:[#allocation8 + $0x508] ss:$16 sps:$4 sm:$0xff]  }
 0x1b3   :  { %2338 = vmatpush2.bf16.msra.mxu1 %v3830_v11  ;;  %2355 = vmatpush1.bf16.msra.mxu0 %v3833_v34  ;;  %v3917_v11 = vld [vmem:[#allocation8 + $0x788] ss:$16 sps:$4 sm:$0xff]   ;;  %v3922_v34 = vld [vmem:[#allocation8 + $0x76c] ss:$16 sps:$4 sm:$0xff]  }
 0x1b4   :  { %2339 = vmatprep.subr.bf16.mxu1 %v3838_v35  ;;  %2356 = vmatprep.subr.bf16.mxu0 %v3841_v37  ;;  %v3934_v35 = vld [vmem:[#allocation10 + $0x74] ss:$8 sps:$4 sm:$0xff]   ;;  %v3920_v37 = vld [vmem:[#allocation8 + $0x768] ss:$16 sps:$4 sm:$0xff]  }
 0x1b7   :  { %2340 = vmatpush2.bf16.msra.mxu1 %v3836_v38  ;;  %2357 = vmatpush1.bf16.msra.mxu0 %v3839_v39  ;;  %v3932_v38 = vld [vmem:[#allocation10 + $0x70] ss:$8 sps:$4 sm:$0xff]   ;;  %v3925_v39 = vld [vmem:[#allocation8 + $0x74c] ss:$16 sps:$4 sm:$0xff]  }
 0x1b8   :  { %2341 = vmatprep.subr.bf16.mxu1 %v3844_v41  ;;  %2358 = vmatprep.subr.bf16.mxu0 %v3847_v42  ;;  %v3937_v41 = vld [vmem:[#allocation10 + $0x64] ss:$8 sps:$4 sm:$0xff]  }
 0x1bb   :  { %2342 = vmatpush2.bf16.msra.mxu1 %v3842_v28  ;;  %2359 = vmatpush1.bf16.msra.mxu0 %v3845_v43  ;;  %v3923_v28 = vld [vmem:[#allocation8 + $0x748] ss:$16 sps:$4 sm:$0xff]  }
 0x1bc   :  { %2360 = vmatprep.subr.bf16.mxu0 %v3850_v44  ;;  %2393 = vmatprep.subr.bf16.mxu1 %v3853_v40  ;;  %v3935_v43 = vld [vmem:[#allocation10 + $0x60] ss:$8 sps:$4 sm:$0xff]   ;;  %v3928_v40 = vld [vmem:[#allocation8 + $0x72c] ss:$16 sps:$4 sm:$0xff]  }
 0x1be   :  { %2344 = vmatmul.mubr.bf16.vlgmr.msra.gmra.mxu1 %v4333_v59  ;;  %v3866_v59 = vld [vmem:[#allocation8 + $0x408] ss:$16 sps:$4 sm:$0xff]  }
 0x1bf   :  { %2361 = vmatpush1.bf16.msra.mxu0 %v3848_v45  ;;  %2394 = vmatpush1.bf16.msra.mxu1 %v3851_v46  ;;  %v3940_v45 = vld [vmem:[#allocation10 + $0x54] ss:$8 sps:$4 sm:$0xff]  }
 0x1c0   :  { %2425 = vmatprep.mubr.bf16.mxu1 %v4341_v27  ;;  %2362 = vmatprep.subr.bf16.mxu0 %v3856_v47  ;;  %v3877_v27 = vld [vmem:[#allocation8 + $0x66c] ss:$16 sps:$4 sm:$0xff]   ;;  %v3926_v47 = vld [vmem:[#allocation8 + $0x728] ss:$16 sps:$4 sm:$0xff]  }
 0x1c1   :  { %2395 = vmatprep.subr.bf16.mxu1 %v3859_v48  ;;  %v3938_v48 = vld [vmem:[#allocation10 + $0x50] ss:$8 sps:$4 sm:$0xff]  }
 0x1c3   :  { %2363 = vmatpush1.bf16.msra.mxu0 %v3854_v49  ;;  %2396 = vmatpush1.bf16.msra.mxu1 %v3857_v50  ;;  %v3943_v50 = vld [vmem:[#allocation10 + $0x44] ss:$8 sps:$4 sm:$0xff]  }
 0x1c4   :  { %2364 = vmatprep.subr.bf16.mxu0 %v3862_v56  ;;  %2397 = vmatprep.subr.bf16.mxu1 %v3865_v51  ;;  %v3929_v56 = vld [vmem:[#allocation8 + $0x708] ss:$16 sps:$4 sm:$0xff]  }
 0x1c5   :  { %v3941_v51 = vld [vmem:[#allocation10 + $0x40] ss:$8 sps:$4 sm:$0xff]  }
 0x1c7   :  { %2365 = vmatpush1.bf16.msra.mxu0 %v3860_v52  ;;  %2398 = vmatpush1.bf16.msra.mxu1 %v3863_v53  ;;  %v3946_v52 = vld [vmem:[#allocation10 + $0x34] ss:$8 sps:$4 sm:$0xff]   ;;  %v3944_v53 = vld [vmem:[#allocation10 + $0x30] ss:$8 sps:$4 sm:$0xff]  }
 0x1c8   :  { %2366 = vmatprep.subr.bf16.mxu0 %v3868_v54  ;;  %2399 = vmatprep.subr.bf16.mxu1 %v3871_v55  ;;  %v3949_v54 = vld [vmem:[#allocation10 + $0x24] ss:$8 sps:$4 sm:$0xff]  }
 0x1cb   :  { %2367 = vmatpush1.bf16.msra.mxu0 %v3866_v59  ;;  %2400 = vmatpush1.bf16.msra.mxu1 %v3869_v57  ;;  %v3947_v59 = vld [vmem:[#allocation10 + $0x20] ss:$8 sps:$4 sm:$0xff]  }
 0x1cc   :  { %2368 = vmatprep.subr.bf16.mxu0 %v3874_v58  ;;  %2401 = vmatprep.subr.bf16.mxu1 %v3877_v27  ;;  %v3952_v58 = vld [vmem:[#allocation10 + $0x14] ss:$8 sps:$4 sm:$0xff]  }
 0x1cf   :  { %2369 = vmatpush2.bf16.msra.mxu0 %v3872_v60  ;;  %2402 = vmatpush1.bf16.msra.mxu1 %v3875_v61  ;;  %v3950_v60 = vld [vmem:[#allocation10 + $0x10] ss:$8 sps:$4 sm:$0xff]  }
 0x1d0   :  { %2370 = vmatprep.subr.bf16.mxu0 %v3880_v62  ;;  %2403 = vmatprep.subr.bf16.mxu1 %v3883_v63  ;;  %v3955_v62 = vld [vmem:[#allocation10 + $0x4] ss:$8 sps:$4 sm:$0xff]   ;;  %v3980_v63 = vld [vmem:[#allocation10 + $0x170] ss:$8 sps:$4 sm:$0xff]  }
 0x1d3   :  { %2371 = vmatpush2.bf16.msra.mxu0 %v3878_v1  ;;  %2404 = vmatpush1.bf16.msra.mxu1 %v3881_v2  ;;  %v3982_v1 = vld [vmem:[#allocation10 + $0x174] ss:$8 sps:$4 sm:$0xff]   ;;  %v3985_v2 = vld [vmem:[#allocation10 + $0x164] ss:$8 sps:$4 sm:$0xff]  }
 0x1d4   :  { %2372 = vmatprep.subr.bf16.mxu0 %v3886_v3  ;;  %2405 = vmatprep.subr.bf16.mxu1 %v3889_v23  ;;  %v3983_v3 = vld [vmem:[#allocation10 + $0x160] ss:$8 sps:$4 sm:$0xff]   ;;  %v3958_v23 = vld [vmem:[#allocation10 + $0xf4] ss:$8 sps:$4 sm:$0xff]  }
 0x1d7   :  { %2373 = vmatpush2.bf16.msra.mxu0 %v3884_v4  ;;  %2406 = vmatpush1.bf16.msra.mxu1 %v3887_v5  ;;  %v3988_v4 = vld [vmem:[#allocation10 + $0x154] ss:$8 sps:$4 sm:$0xff]   ;;  %v3956_v5 = vld [vmem:[#allocation10 + $0xf0] ss:$8 sps:$4 sm:$0xff]  }
 0x1d8   :  { %2374 = vmatprep.subr.bf16.mxu0 %v3892_v12  ;;  %2407 = vmatprep.subr.bf16.mxu1 %v3895_v13  ;;  %v3986_v12 = vld [vmem:[#allocation10 + $0x150] ss:$8 sps:$4 sm:$0xff]   ;;  %v3961_v13 = vld [vmem:[#allocation10 + $0xe4] ss:$8 sps:$4 sm:$0xff]  }
 0x1db   :  { %2375 = vmatpush2.bf16.msra.mxu0 %v3890_v14  ;;  %2408 = vmatpush1.bf16.msra.mxu1 %v3893_v15  ;;  %v3991_v14 = vld [vmem:[#allocation10 + $0x144] ss:$8 sps:$4 sm:$0xff]   ;;  %v3959_v15 = vld [vmem:[#allocation10 + $0xe0] ss:$8 sps:$4 sm:$0xff]  }
 0x1dc   :  { %2376 = vmatprep.subr.bf16.mxu0 %v3898_v16  ;;  %2409 = vmatprep.subr.bf16.mxu1 %v3901_v17  ;;  %v3989_v16 = vld [vmem:[#allocation10 + $0x140] ss:$8 sps:$4 sm:$0xff]   ;;  %v3964_v17 = vld [vmem:[#allocation10 + $0xd4] ss:$8 sps:$4 sm:$0xff]  }
 0x1df   :  { %2377 = vmatpush2.bf16.msra.mxu0 %v3896_v0  ;;  %2410 = vmatpush2.bf16.msra.mxu1 %v3899_v18  ;;  %v3994_v0 = vld [vmem:[#allocation10 + $0x134] ss:$8 sps:$4 sm:$0xff]   ;;  %v3962_v18 = vld [vmem:[#allocation10 + $0xd0] ss:$8 sps:$4 sm:$0xff]  }
 0x1e0   :  { %2378 = vmatprep.subr.bf16.mxu0 %v3904_v19  ;;  %2411 = vmatprep.subr.bf16.mxu1 %v3907_v20  ;;  %v3992_v19 = vld [vmem:[#allocation10 + $0x130] ss:$8 sps:$4 sm:$0xff]   ;;  %v3967_v20 = vld [vmem:[#allocation10 + $0xc4] ss:$8 sps:$4 sm:$0xff]  }
 0x1e3   :  { %2379 = vmatpush2.bf16.msra.mxu0 %v3902_v21  ;;  %2412 = vmatpush2.bf16.msra.mxu1 %v3905_v22  ;;  %v3997_v21 = vld [vmem:[#allocation10 + $0x124] ss:$8 sps:$4 sm:$0xff]   ;;  %v3965_v22 = vld [vmem:[#allocation10 + $0xc0] ss:$8 sps:$4 sm:$0xff]  }
 0x1e4   :  { %2380 = vmatprep.subr.bf16.mxu0 %v3910_v9  ;;  %2413 = vmatprep.subr.bf16.mxu1 %v3913_v24  ;;  %v3995_v9 = vld [vmem:[#allocation10 + $0x120] ss:$8 sps:$4 sm:$0xff]   ;;  %v3970_v24 = vld [vmem:[#allocation10 + $0xb4] ss:$8 sps:$4 sm:$0xff]  }
 0x1e7   :  { %2381 = vmatpush2.bf16.msra.mxu0 %v3908_v26  ;;  %2414 = vmatpush2.bf16.msra.mxu1 %v3911_v29  ;;  %v4000_v26 = vld [vmem:[#allocation10 + $0x114] ss:$8 sps:$4 sm:$0xff]   ;;  %v3968_v29 = vld [vmem:[#allocation10 + $0xb0] ss:$8 sps:$4 sm:$0xff]  }
 0x1e8   :  { %2382 = vmatprep.subr.bf16.mxu0 %v3916_v25  ;;  %2415 = vmatprep.subr.bf16.mxu1 %v3919_v31  ;;  %v3998_v25 = vld [vmem:[#allocation10 + $0x110] ss:$8 sps:$4 sm:$0xff]   ;;  %v3973_v31 = vld [vmem:[#allocation10 + $0xa4] ss:$8 sps:$4 sm:$0xff]  }
 0x1eb   :  { %2383 = vmatpush2.bf16.msra.mxu0 %v3914_v32  ;;  %2416 = vmatpush2.bf16.msra.mxu1 %v3917_v11  ;;  %v4003_v32 = vld [vmem:[#allocation10 + $0x104] ss:$8 sps:$4 sm:$0xff]   ;;  %v3971_v11 = vld [vmem:[#allocation10 + $0xa0] ss:$8 sps:$4 sm:$0xff]  }
 0x1ec   :  { %2417 = vmatprep.subr.bf16.mxu1 %v3922_v34  ;;  %2846 = vmatprep.subr.bf16.mxu0 %v3934_v35  ;;  %v4001_v34 = vld [vmem:[#allocation10 + $0x100] ss:$8 sps:$4 sm:$0xff]   ;;  %v3976_v35 = vld [vmem:[#allocation10 + $0x94] ss:$8 sps:$4 sm:$0xff]  }
 0x1ee   :  { %2385 = vmatmul.mubr.bf16.vlgmr.msra.gmra.mxu0 %v4348_v6  ;;  %v4363_v42 = vpop.f32.mrf.mxu0  ;;  %v3931_v6 = vld [vmem:[#allocation8 + $0x70c] ss:$16 sps:$4 sm:$0xff]  }
 0x1ef   :  { %2418 = vmatpush2.bf16.msra.mxu1 %v3920_v37  ;;  %2847 = vmatpush1.bf16.msra.mxu0 %v3932_v38  ;;  %v4006_v37 = vld [vmem:[#allocation10 + $0x1f4] ss:$8 sps:$4 sm:$0xff]   ;;  %v3974_v38 = vld [vmem:[#allocation10 + $0x90] ss:$8 sps:$4 sm:$0xff]  }
 0x1f0   :  { %v4365_v44 = vpop.f32.mrf.mxu0  ;;  %2419 = vmatprep.subr.bf16.mxu1 %v3925_v39  ;;  %2848 = vmatprep.subr.bf16.mxu0 %v3937_v41  ;;  %v4004_v39 = vld [vmem:[#allocation10 + $0x1f0] ss:$8 sps:$4 sm:$0xff]   ;;  %v3979_v41 = vld [vmem:[#allocation10 + $0x84] ss:$8 sps:$4 sm:$0xff]  }
 0x1f2   :  { %v2144_v46 = vpop.f32.mrf.mxu0 }
 0x1f3   :  { %2420 = vmatpush2.bf16.msra.mxu1 %v3923_v28  ;;  %2849 = vmatpush1.bf16.msra.mxu0 %v3935_v43  ;;  %v4009_v28 = vld [vmem:[#allocation10 + $0x1e4] ss:$8 sps:$4 sm:$0xff]   ;;  %v3977_v43 = vld [vmem:[#allocation10 + $0x80] ss:$8 sps:$4 sm:$0xff]  }
 0x1f4   :  { %v2145_v49 = vpop.f32.mrf.mxu0  ;;  %2421 = vmatprep.subr.bf16.mxu1 %v3928_v40  ;;  %2850 = vmatprep.subr.bf16.mxu0 %v3940_v45  ;;  %v4007_v40 = vld [vmem:[#allocation10 + $0x1e0] ss:$8 sps:$4 sm:$0xff]  }
 0x1f5   :  { %v4375_v49 = vld [vmem:[%s4406_s4] sm:$0xf] }
 0x1f7   :  { %2422 = vmatpush2.bf16.msra.mxu1 %v3926_v47  ;;  %2851 = vmatpush1.bf16.msra.mxu0 %v3938_v48  ;;  %v4012_v47 = vld [vmem:[#allocation10 + $0x1d4] ss:$8 sps:$4 sm:$0xff]   ;;  %v4010_v48 = vld [vmem:[#allocation10 + $0x1d0] ss:$8 sps:$4 sm:$0xff]  }
 0x1f8   :  { %2423 = vmatprep.subr.bf16.mxu1 %v3931_v6  ;;  %2852 = vmatprep.subr.bf16.mxu0 %v3943_v50 }
 0x1fb   :  { %2424 = vmatpush2.bf16.msra.mxu1 %v3929_v56  ;;  %2853 = vmatpush1.bf16.msra.mxu0 %v3941_v51  ;;  %v4013_v56 = vld [vmem:[#allocation10 + $0x1c0] ss:$8 sps:$4 sm:$0xff]   ;;  %v4015_v51 = vld [vmem:[#allocation10 + $0x1c4] ss:$8 sps:$4 sm:$0xff]  }
 0x1fc   :  { %2854 = vmatprep.subr.bf16.mxu0 %v3946_v52  ;;  %2887 = vmatprep.subr.bf16.mxu1 %v3982_v1  ;;  %v809_v52 = vrot.slane %v4375_v49, %v4299_v8 }
 0x1fe   :  { %2426 = vmatmul.mubr.bf16.vlgmr.msra.gmra.mxu1 %v4354_v36  ;;  %v4368_v55 = vpop.f32.mrf.mxu1  ;;  %v3953_v36 = vld [vmem:[#allocation10] ss:$8 sps:$4 sm:$0xff]  }
 0x1ff   :  { %2855 = vmatpush1.bf16.msra.mxu0 %v3944_v53  ;;  %2888 = vmatpush1.bf16.msra.mxu1 %v3980_v63  ;;  %v4018_v53 = vld [vmem:[#allocation10 + $0x1b4] ss:$8 sps:$4 sm:$0xff]  }
 0x200   :  { %v4370_v57 = vpop.f32.mrf.mxu1  ;;  %2856 = vmatprep.subr.bf16.mxu0 %v3949_v54  ;;  %2889 = vmatprep.subr.bf16.mxu1 %v3985_v2  ;;  %v813_v54 = vrot.slane %v4375_v49, %v4304_v10 }
 0x202   :  { %v2185_v27 = vpop.f32.mrf.mxu1 }
 0x203   :  { %2857 = vmatpush1.bf16.msra.mxu0 %v3947_v59  ;;  %2890 = vmatpush1.bf16.msra.mxu1 %v3983_v3  ;;  %v4016_v59 = vld [vmem:[#allocation10 + $0x1b0] ss:$8 sps:$4 sm:$0xff]   ;;  %v2141_v27 = vadd.f32 %v4363_v42, %v809_v52 }
 0x204   :  { %v2186_v61 = vpop.f32.mrf.mxu1  ;;  %2858 = vmatprep.subr.bf16.mxu0 %v3952_v58  ;;  %2891 = vmatprep.subr.bf16.mxu1 %v3988_v4  ;;  %v4021_v58 = vld [vmem:[#allocation10 + $0x1a4] ss:$8 sps:$4 sm:$0xff]   ;;  %v4024_v4 = vld [vmem:[#allocation10 + $0x194] ss:$8 sps:$4 sm:$0xff]   ;;  %v4022_v42 = vld [vmem:[#allocation10 + $0x190] ss:$8 sps:$4 sm:$0xff]  }
 0x205   :  { %v2182_v61 = vadd.f32 %v4368_v55, %v2141_v27 }
 0x207   :  { %2859 = vmatpush1.bf16.msra.mxu0 %v3950_v60  ;;  %2892 = vmatpush1.bf16.msra.mxu1 %v3986_v12  ;;  %v2143_v60 = vadd.f32 %v4365_v44, %v813_v54 }
 0x208   :  { %2860 = vmatprep.subr.bf16.mxu0 %v3955_v62  ;;  %2893 = vmatprep.subr.bf16.mxu1 %v3991_v14  ;;  %v4019_v62 = vld [vmem:[#allocation10 + $0x1a0] ss:$8 sps:$4 sm:$0xff]  }
 0x209   :  { %v2184_v63 = vadd.f32 %v4370_v57, %v2143_v60  ;;  %v4027_v57 = vld [vmem:[#allocation10 + $0x184] ss:$8 sps:$4 sm:$0xff]  }
 0x20b   :  { %2861 = vmatpush1.bf16.msra.mxu0 %v3953_v36  ;;  %2894 = vmatpush1.bf16.msra.mxu1 %v3989_v16 }
 0x20c   :  { %2862 = vmatprep.subr.bf16.mxu0 %v3958_v23  ;;  %2895 = vmatprep.subr.bf16.mxu1 %v3994_v0 }
 0x20f   :  { %2863 = vmatpush2.bf16.msra.mxu0 %v3956_v5  ;;  %2896 = vmatpush1.bf16.msra.mxu1 %v3992_v19 }
 0x210   :  { %2864 = vmatprep.subr.bf16.mxu0 %v3961_v13  ;;  %2897 = vmatprep.subr.bf16.mxu1 %v3997_v21 }
 0x213   :  { %2865 = vmatpush2.bf16.msra.mxu0 %v3959_v15  ;;  %2898 = vmatpush1.bf16.msra.mxu1 %v3995_v9  ;;  %v4025_v15 = vld [vmem:[#allocation10 + $0x180] ss:$8 sps:$4 sm:$0xff]  }
 0x214   :  { %2866 = vmatprep.subr.bf16.mxu0 %v3964_v17  ;;  %2899 = vmatprep.subr.bf16.mxu1 %v4000_v26 }
 0x217   :  { %2867 = vmatpush2.bf16.msra.mxu0 %v3962_v18  ;;  %2900 = vmatpush1.bf16.msra.mxu1 %v3998_v25  ;;  %v4029_v25 = vld [vmem:[#allocation11 + $0x38] sm:$0xff]  }
 0x218   :  { %2868 = vmatprep.subr.bf16.mxu0 %v3967_v20  ;;  %2901 = vmatprep.subr.bf16.mxu1 %v4003_v32  ;;  %v4031_v32 = vld [vmem:[#allocation11 + $0x30] sm:$0xff]  }
 0x21b   :  { %2869 = vmatpush2.bf16.msra.mxu0 %v3965_v22  ;;  %2902 = vmatpush1.bf16.msra.mxu1 %v4001_v34  ;;  %v4033_v34 = vld [vmem:[#allocation11 + $0x28] sm:$0xff]  }
 0x21c   :  { %2870 = vmatprep.subr.bf16.mxu0 %v3970_v24  ;;  %2903 = vmatprep.subr.bf16.mxu1 %v4006_v37  ;;  %v4035_v37 = vld [vmem:[#allocation11 + $0x20] sm:$0xff]  }
 0x21f   :  { %2871 = vmatpush2.bf16.msra.mxu0 %v3968_v29  ;;  %2904 = vmatpush2.bf16.msra.mxu1 %v4004_v39  ;;  %v4028_v29 = vld [vmem:[#allocation11 + $0x78] sm:$0xff]  }
 0x220   :  { %2872 = vmatprep.subr.bf16.mxu0 %v3973_v31  ;;  %2905 = vmatprep.subr.bf16.mxu1 %v4009_v28  ;;  %v4030_v31 = vld [vmem:[#allocation11 + $0x70] sm:$0xff]   ;;  %v4037_v39 = vld [vmem:[#allocation11 + $0x18] sm:$0xff]  }
 0x223   :  { %2873 = vmatpush2.bf16.msra.mxu0 %v3971_v11  ;;  %2906 = vmatpush2.bf16.msra.mxu1 %v4007_v40  ;;  %v4032_v11 = vld [vmem:[#allocation11 + $0x68] sm:$0xff]  }
 0x224   :  { %2874 = vmatprep.subr.bf16.mxu0 %v3976_v35  ;;  %2907 = vmatprep.subr.bf16.mxu1 %v4012_v47  ;;  %v4034_v35 = vld [vmem:[#allocation11 + $0x60] sm:$0xff]   ;;  %v821_v47 = vrot.slane %v4375_v49, %v162_v33 }
 0x227   :  { %2875 = vmatpush2.bf16.msra.mxu0 %v3974_v38  ;;  %2908 = vmatpush2.bf16.msra.mxu1 %v4010_v48  ;;  %v4036_v38 = vld [vmem:[#allocation11 + $0x58] sm:$0xff]  }
 0x228   :  { %2876 = vmatprep.subr.bf16.mxu0 %v3979_v41  ;;  %2909 = vmatprep.subr.bf16.mxu1 %v4015_v51  ;;  %v4038_v41 = vld [vmem:[#allocation11 + $0x50] sm:$0xff]  }
 0x22b   :  { %2877 = vmatpush2.bf16.msra.mxu0 %v3977_v43  ;;  %2910 = vmatpush2.bf16.msra.mxu1 %v4013_v56 }
 0x22c   :  { %2911 = vmatprep.subr.bf16.mxu1 %v4018_v53  ;;  %3510 = vmatprep.subr.bf16.mxu0 %v4028_v29 }
 0x22e   :  { %v2222_v45 = vpop.f32.mrf.mxu0 }
 0x22f   :  { %2912 = vmatpush2.bf16.msra.mxu1 %v4016_v59  ;;  %v2223_v1 = vadd.f32 %v2222_v45, %v2182_v61 }
 0x230   :  { %v2224_v46 = vpop.f32.mrf.mxu0  ;;  %2913 = vmatprep.subr.bf16.mxu1 %v4021_v58 }
 0x231   :  { %v2225_v36 = vadd.f32 %v2224_v46, %v2184_v63  ;;  %v817_v46 = vrot.slane %v4375_v49, %v158_v30  ;;  %v4039_v49 = vld [vmem:[#allocation11 + $0x10] sm:$0xff]  }
 0x232   :  { %v2226_v6 = vpop.f32.mrf.mxu0 }
 0x233   :  { %2914 = vmatpush2.bf16.msra.mxu1 %v4019_v62 }
 0x234   :  { %v2227_v50 = vpop.f32.mrf.mxu0  ;;  %2915 = vmatprep.subr.bf16.mxu1 %v4024_v4 }
 0x237   :  { %2916 = vmatpush2.bf16.msra.mxu1 %v4022_v42  ;;  %v2514_v42 = vld [vmem:[%s4408_s6] sm:$0x3] }
 0x238   :  { %2917 = vmatprep.subr.bf16.mxu1 %v4027_v57 }
 0x23b   :  { %2918 = vmatpush2.bf16.msra.mxu1 %v4025_v15 }
 0x23e   :  { %v2263_v2 = vpop.f32.mrf.mxu1 }
 0x23f   :  { %v2264_v3 = vadd.f32 %v2263_v2, %v2223_v1 }
 0x240   :  { %v2265_v23 = vpop.f32.mrf.mxu1 }
 0x241   :  { %vm2434_vm9 = vcmp.ge.f32.partialorder %v2264_v3, 0.0  ;;  %v2438_v5 = vmul.f32 0.01, %v2264_v3  ;;  %v2266_v12 = vadd.f32 %v2265_v23, %v2225_v36  ;;  %v4040_v36 = vld [vmem:[#allocation11 + $0x48] sm:$0xff]  }
 0x242   :  { %v2267_v13 = vpop.f32.mrf.mxu1 }
 0x243   :  { %vm2435_vm10 = vcmp.ge.f32.partialorder %v2266_v12, 0.0  ;;  %v2439_v44 = vmul.f32 0.01, %v2266_v12  ;;  %v2442_v55 = vsel %vm2434_vm9, %v2264_v3, %v2438_v5  ;;  %v4041_v3 = vld [vmem:[#allocation11 + $0x8] sm:$0xff]   ;;  %v4042_v5 = vld [vmem:[#allocation11 + $0x40] sm:$0xff]   ;;  %v2519_v13 = vrot.slane %v2514_v42, %v4299_v8 }
 0x244   :  { %v2268_v14 = vpop.f32.mrf.mxu1  ;;  %v2446_v0 = vpack.c.bf16 %v2442_v55, %v2442_v55 }
 0x245   :  { %v2443_v16 = vsel %vm2435_vm10, %v2266_v12, %v2439_v44  ;;  %v4043_v12 = vld [vmem:[#allocation11] sm:$0xff]   ;;  %v2523_v44 = vrot.slane %v2514_v42, %v4304_v10  ;;  %v3492_v10 = vld [vmem:[%s4410_s8] ss:$0 sm:$0xff] }
 0x246   :  { %v2447_v17 = vpack.c.bf16 %v2443_v16, %v2443_v16 }
 0x248   :  { %2878 = vmatprep.mubr.bf16.mxu0 %v2447_v17 }
 0x249   :  { %2879 = vmatmul.mubr.bf16.vlgmr.msra.gmra.mxu0 %v2446_v0 }
 0x24a   :  { %3511 = vmatpush3.bf16.msra.mxu0 %v4029_v25 }
 0x24b   :  { %3512 = vmatprep.subr.bf16.mxu0 %v4030_v31 }
 0x24e   :  { %3513 = vmatpush3.bf16.msra.mxu0 %v4031_v32 }
 0x24f   :  { %3514 = vmatprep.subr.bf16.mxu0 %v4032_v11 }
 0x252   :  { %3515 = vmatpush3.bf16.msra.mxu0 %v4033_v34 }
 0x253   :  { %3516 = vmatprep.subr.bf16.mxu0 %v4034_v35 }
 0x256   :  { %3517 = vmatpush3.bf16.msra.mxu0 %v4035_v37 }
 0x257   :  { %3518 = vmatprep.subr.bf16.mxu0 %v4036_v38 }
 0x25a   :  { %3519 = vmatpush3.bf16.msra.mxu0 %v4037_v39 }
 0x25b   :  { %3520 = vmatprep.subr.bf16.mxu0 %v4038_v41 }
 0x25e   :  { %3521 = vmatpush3.bf16.msra.mxu0 %v4039_v49 }
 0x25f   :  { %3522 = vmatprep.subr.bf16.mxu0 %v4040_v36 }
 0x262   :  { %3523 = vmatpush3.bf16.msra.mxu0 %v4041_v3 }
 0x263   :  { %3524 = vmatprep.subr.bf16.mxu0 %v4042_v5 }
 0x266   :  { %3525 = vmatpush3.bf16.msra.mxu0 %v4043_v12 }
 0x26e   :  { %v2304_v18 = vpop.f32.mrf.mxu0 }
 0x26f   :  { %v2305_v48 = vadd.f32 %v2304_v18, %v817_v46 }
 0x270   :  { %v2306_v19 = vpop.f32.mrf.mxu0 }
 0x271   :  { %v2307_v6 = vadd.f32 %v2306_v19, %v821_v47 }
 0x272   :  { %v2308_v20 = vpop.f32.mrf.mxu0 }
 0x274   :  { %v2309_v21 = vpop.f32.mrf.mxu0 }
 0x27e   :  { %v2345_v22 = vpop.f32.mrf.mxu1 }
 0x27f   :  { %v2346_v50 = vadd.f32 %v2345_v22, %v2305_v48 }
 0x280   :  { %v2347_v9 = vpop.f32.mrf.mxu1 }
 0x281   :  { %v2348_v56 = vadd.f32 %v2347_v9, %v2307_v6 }
 0x282   :  { %v2349_v24 = vpop.f32.mrf.mxu1 }
 0x284   :  { %v2350_v26 = vpop.f32.mrf.mxu1 }
 0x2ae   :  { %v2386_v28 = vpop.f32.mrf.mxu0 }
 0x2af   :  { %v2387_v51 = vadd.f32 %v2386_v28, %v2346_v50 }
 0x2b0   :  { %v2388_v43 = vpop.f32.mrf.mxu0 }
 0x2b1   :  { %v2389_v53 = vadd.f32 %v2388_v43, %v2348_v56 }
 0x2b2   :  { %v2390_v40 = vpop.f32.mrf.mxu0 }
 0x2b4   :  { %v2391_v45 = vpop.f32.mrf.mxu0 }
 0x2be   :  { %v2427_v52 = vpop.f32.mrf.mxu1 }
 0x2bf   :  { %v2428_v54 = vadd.f32 %v2427_v52, %v2387_v51 }
 0x2c0   :  { %v2429_v59 = vpop.f32.mrf.mxu1 }
 0x2c1   :  { %vm2436_vm11 = vcmp.ge.f32.partialorder %v2428_v54, 0.0  ;;  %v2440_v58 = vmul.f32 0.01, %v2428_v54  ;;  %v2430_v27 = vadd.f32 %v2429_v59, %v2389_v53 }
 0x2c2   :  { %v2431_v60 = vpop.f32.mrf.mxu1 }
 0x2c3   :  { %vm2437_vm12 = vcmp.ge.f32.partialorder %v2430_v27, 0.0  ;;  %v2441_v61 = vmul.f32 0.01, %v2430_v27  ;;  %v2444_v30 = vsel %vm2436_vm11, %v2428_v54, %v2440_v58 }
 0x2c4   :  { %v2432_v62 = vpop.f32.mrf.mxu1  ;;  %v2448_v33 = vpack.c.bf16 %v2444_v30, %v2444_v30 }
 0x2c5   :  { %v2445_v7 = vsel %vm2437_vm12, %v2430_v27, %v2441_v61 }
 0x2c6   :  { %v2449_v63 = vpack.c.bf16 %v2445_v7, %v2445_v7 }
 0x2c8   :  { %2919 = vmatprep.mubr.bf16.mxu1 %v2449_v63 }
 0x2c9   :  { %2920 = vmatmul.mubr.bf16.vlgmr.msra.gmra.mxu1 %v2448_v33 }
 0x309   :  { %v2880_v1 = vpop.f32.mrf.mxu0 }
 0x30a   :  { %v2881_v55 = vadd.f32 %v2880_v1, %v2519_v13 }
 0x30b   :  { %v2882_v2 = vpop.f32.mrf.mxu0 }
 0x30c   :  { %v2883_v15 = vadd.f32 %v2882_v2, %v2523_v44 }
 0x30d   :  { %v2884_v23 = vpop.f32.mrf.mxu0 }
 0x30f   :  { %v2885_v4 = vpop.f32.mrf.mxu0 }
 0x389   :  { %v2921_v14 = vpop.f32.mrf.mxu1 }
 0x38a   :  { %v2922_v57 = vadd.f32 %v2921_v14, %v2881_v55 }
 0x38b   :  { %v2923_v16 = vpop.f32.mrf.mxu1 }
 0x38c   :  { %vm2928_vm13 = vcmp.ge.f32.partialorder %v2922_v57, 0.0  ;;  %v2930_v17 = vmul.f32 0.01, %v2922_v57  ;;  %v2924_v0 = vadd.f32 %v2923_v16, %v2883_v15 }
 0x38d   :  { %v2925_v18 = vpop.f32.mrf.mxu1 }
 0x38e   :  { %vm2929_vm14 = vcmp.ge.f32.partialorder %v2924_v0, 0.0  ;;  %v2931_v19 = vmul.f32 0.01, %v2924_v0  ;;  %v2932_v20 = vsel %vm2928_vm13, %v2922_v57, %v2930_v17 }
 0x38f   :  { %v2926_v21 = vpop.f32.mrf.mxu1  ;;  %v2934_v24 = vpack.c.bf16 %v2932_v20, %v2932_v20 }
 0x390   :  { %v2933_v22 = vsel %vm2929_vm14, %v2924_v0, %v2931_v19 }
 0x391   :  { %v2935_v9 = vpack.c.bf16 %v2933_v22, %v2933_v22 }
 0x393   :  { %3103 = vmatprep.mubr.bf16.mxu0 %v2935_v9 }
 0x394   :  { %3104 = vmatmul.mubr.bf16.vlgmr.msra.gmra.mxu0 %v2934_v24 }
 0x454   :  { %v3526_v8 = vpop.f32.mrf.mxu0 }
 0x456   :  { %v3527_v26 = vpop.f32.mrf.mxu0 }
 0x457   :  { %v3528_v29 = vadd.f32 %v3527_v26, %v3526_v8 }
 0x458   :  { %v3529_v25 = vpop.f32.mrf.mxu0 }
 0x459   :  { %v3106_v31 = vadd.f32 %v3528_v29, %v3492_v10 }
 0x45a   :  { %v3530_v32 = vpop.f32.mrf.mxu0 }
 0x45b   :  { %v3509_v11 = vmul.f32 -1.442695, %v3106_v31 }
 0x45d   :  { %4044 = vpow2.f32 %v3509_v11 }
 0x46a   :  { %v4045_v34 = vpop.eup %4044 }
 0x46b   :  { %v3114_v35 = vadd.f32 1.0, %v4045_v34 }
 0x46d   :  { %4046 = vrcp.f32 %v3114_v35 }
 0x47a   :  { %v4047_v37 = vpop.eup %4046 }
 0x47b   :  { %3117 = vst [vmem:[#allocation13] sm:$0xff] %v4047_v37 }
 0x47c   :  { %4179 = shalt.err (!%p4176_p6)
}
 0x47d   :  { %3127 = dma.vmem_to_hbm [thread:$0]  %s3125_s25, 128, %s4411_s9, [#allocation4]  }
 0x47e   :  { %4196 = dma.done.wait [#allocation4], 128  }
 0x47f   :  { %4197 = vsyncadd [#allocation4], 4294967168 }
 0x480   :  { %3131 = vsyncpa [#allocation3], 1 }
 0x481   :  { %3132 = vsyncpa [#allocation6], 1 }
 0x482   :  { %3133 = vsyncpa [#allocation9], 1 }
 0x483   :  { %3134 = vsyncpa [#allocation12], 1 }
 0x484   :  { %3135 = vsyncpa [#allocation4], 1 }

</bundles_post_ra>
